<compile_context>
chip_gen: v7x
topology: tpu7x:2x2x1
jax: 0.10.0
libtpu: 0.0.40
codegen_flags: <defaults>
</compile_context>

<pallas_src>
import jax
import jax.numpy as jnp
from jax import lax
from jax.experimental import pallas as pl
from jax.experimental.pallas import tpu as pltpu

EPS = 1e-5  # torch InstanceNorm2d default eps


# ---------------------------------------------------------------------------
# in-kernel helpers (traced inside the Pallas kernel)
# ---------------------------------------------------------------------------
def _instance_norm(z):
    """InstanceNorm2d (affine=False) on (B, C, HW): per-(b,c) lane reduction."""
    m = jnp.mean(z, axis=-1, keepdims=True)
    ez2 = jnp.mean(z * z, axis=-1, keepdims=True)
    var = jnp.maximum(ez2 - m * m, 0.0)          # one-pass biased variance
    return (z - m) * lax.rsqrt(var + EPS)


def _shift_flat(src, delta):
    """result[..., p] = src[..., p + delta] (zero outside [0, HW))  -- static."""
    if delta == 0:
        return src
    n = src.shape[-1]
    pad = jnp.zeros(src.shape[:-1] + (abs(delta),), src.dtype)
    if delta > 0:
        return jnp.concatenate([src[..., delta:], pad], axis=-1)
    return jnp.concatenate([pad, src[..., : n + delta]], axis=-1)


def _shifted_taps(src, col, W):
    """9 conv-tap views of src (B, C, HW) in (dh, dw) order, halo handled by
    zero-fill + column-edge masks. Computed once, reused by both mixes."""
    masked = {
        -1: jnp.where(col <= W - 2, src, 0.0),   # for dw = -1 taps
        0: src,
        +1: jnp.where(col >= 1, src, 0.0),       # for dw = +1 taps
    }
    taps = []
    for dh in (-1, 0, 1):
        for dw in (-1, 0, 1):
            taps.append(_shift_flat(masked[dw], dh * W + dw))
    return taps


def _grouped_conv_mix(sx, sy, wm_ref, bm_ref, p):
    """MixingBlock: grouped 3x3 conv (+bias) -> PReLU -> InstanceNorm.
    wm_ref: (18, C, 1) VMEM (rows 0..8 x-taps, 9..17 y-taps), bm_ref: (C, 1)."""
    acc = wm_ref[0] * sx[0] + wm_ref[9] * sy[0]
    for t in range(1, 9):
        acc = acc + wm_ref[t] * sx[t] + wm_ref[9 + t] * sy[t]
    acc = acc + bm_ref[...]
    acc = jnp.where(acc >= 0.0, acc, p * acc)    # PReLU (single slope)
    return _instance_norm(acc)


def make_kernel(B, C, H, W, fin, fout, generate_masked):
    HW = H * W
    n_lin = len(fin)

    def kernel(*refs):
        prelu_ref = refs[0]                       # SMEM (n_prelu,)
        xy_ref = refs[1]                          # VMEM (2, B, C, HW)
        m1w_ref, m1b_ref = refs[2], refs[3]
        lin_refs = refs[4:4 + 2 * n_lin]
        nxt = 4 + 2 * n_lin
        if generate_masked:
            m2w_ref, m2b_ref = refs[nxt], refs[nxt + 1]
            nxt += 2
        out_ref = refs[nxt]                       # VMEM (B, c_out, HW)

        xv = xy_ref[0]                            # (B, C, HW)
        yv = xy_ref[1]

        # column index of every flattened pixel (for conv edge masking)
        col = lax.broadcasted_iota(jnp.int32, (1, 1, HW), 2) % W
        sx = _shifted_taps(xv, col, W)            # hoisted; shared by mix1/mix2
        sy = _shifted_taps(yv, col, W)

        pidx = 0
        z = _grouped_conv_mix(sx, sy, m1w_ref, m1b_ref, prelu_ref[pidx])
        pidx += 1

        # PixelwiseLinear: (co, ci) @ (ci, HW) on the MXU, per batch element.
        for li in range(n_lin):
            wl = lin_refs[2 * li][...]            # (co, ci)
            bl = lin_refs[2 * li + 1][...]        # (co, 1)
            p = prelu_ref[pidx]; pidx += 1
            rows = [jnp.dot(wl, z[b], preferred_element_type=jnp.float32) + bl
                    for b in range(B)]
            z = jnp.stack(rows, axis=0)           # (B, co, HW)
            z = jnp.where(z >= 0.0, z, p * z)

        if generate_masked:
            z2 = _grouped_conv_mix(sx, sy, m2w_ref, m2b_ref, prelu_ref[pidx])
            pidx += 1
            z = _instance_norm(z2 * z)

        out_ref[...] = z                          # lane-dense (B, c_out, 256) store

    return kernel


# ---------------------------------------------------------------------------
# wrapper
# ---------------------------------------------------------------------------
def mixing_mask_attention_block(x, y, params, fin, fout, generate_masked):
    B, C, H, W = x.shape
    HW = H * W
    c_out = fout[-1]
    assert fin[0] == C, "first pixelwise-linear layer must take ch_out channels"
    if generate_masked:
        assert c_out == C, "masked path multiplies (B, ch_out, H, W) tensors"

    # merge x/y into one lane-dense input (single DMA); no jnp.pad copies.
    xy = jnp.stack([x.reshape(B, C, HW), y.reshape(B, C, HW)], axis=0)

    def prep_mix(w, b):
        # torch (C, 2, 3, 3) -> (18, C, 1): row s*9 + kh*3 + kw, col = channel
        wt = jnp.transpose(w, (1, 2, 3, 0)).reshape(2 * 9, C)[:, :, None]
        return wt.astype(jnp.float32), jnp.reshape(b, (C, 1)).astype(jnp.float32)

    args, specs, prelu_vals = [xy], [pl.BlockSpec((2, B, C, HW), lambda i: (0, 0, 0, 0))], []

    w1, b1, p1 = params["mix1"]
    m1w, m1b = prep_mix(w1, b1)
    args += [m1w, m1b]
    specs += [pl.BlockSpec((18, C, 1), lambda i: (0, 0, 0)),
              pl.BlockSpec((C, 1), lambda i: (0, 0))]
    prelu_vals.append(p1)

    for (w, b, p), ci, co in zip(params["lin"], fin, fout):
        args += [w.astype(jnp.float32), jnp.reshape(b, (co, 1)).astype(jnp.float32)]
        specs += [pl.BlockSpec((co, ci), lambda i: (0, 0)),
                  pl.BlockSpec((co, 1), lambda i: (0, 0))]
        prelu_vals.append(p)

    if generate_masked:
        w2, b2, p2 = params["mix2"]
        m2w, m2b = prep_mix(w2, b2)
        args += [m2w, m2b]
        specs += [pl.BlockSpec((18, C, 1), lambda i: (0, 0, 0)),
                  pl.BlockSpec((C, 1), lambda i: (0, 0))]
        prelu_vals.append(p2)

    prelu = jnp.stack([jnp.asarray(v, jnp.float32) for v in prelu_vals])

    in_specs = [pl.BlockSpec(memory_space=pltpu.MemorySpace.SMEM)] + specs
    kernel = make_kernel(B, C, H, W, fin, fout, generate_masked)

    out = pl.pallas_call(
        kernel,
        out_shape=jax.ShapeDtypeStruct((B, c_out, HW), jnp.float32),
        grid=(1,),                      # whole tiny batch in one step
        in_specs=in_specs,
        out_specs=pl.BlockSpec((B, c_out, HW), lambda i: (0, 0, 0)),
        compiler_params=pltpu.CompilerParams(dimension_semantics=("arbitrary",)),
    )(prelu, *args)

    return out.reshape(B, c_out, H, W)   # back to NCHW outside the kernel


# ---------------------------------------------------------------------------
# deterministic synthetic parameters (torch shapes)
# ---------------------------------------------------------------------------
def init_params(key, C, fin, fout, generate_masked):
    keys = iter(jax.random.split(key, 16))

    def conv_mix():
        w = 0.2 * jax.random.normal(next(keys), (C, 2, 3, 3), jnp.float32)
        b = 0.1 * jax.random.normal(next(keys), (C,), jnp.float32)
        return (w, b, jnp.float32(0.25))          # torch PReLU default slope

    params = {"mix1": conv_mix(), "lin": []}
    for ci, co in zip(fin, fout):
        w = 0.2 * jax.random.normal(next(keys), (co, ci), jnp.float32)
        b = 0.1 * jax.random.normal(next(keys), (co,), jnp.float32)
        params["lin"].append((w, b, jnp.float32(0.25)))
    if generate_masked:
        params["mix2"] = conv_mix()
    return params


# ---------------------------------------------------------------------------
# pure-JAX reference (mirrors the PyTorch module, independent of the kernel)
# ---------------------------------------------------------------------------
def ref_forward(x, y, params, fin, fout, generate_masked):
    B, C, H, W = x.shape

    def instnorm(z):
        m = jnp.mean(z, axis=(2, 3), keepdims=True)
        v = jnp.mean((z - m) ** 2, axis=(2, 3), keepdims=True)
        return (z - m) * lax.rsqrt(v + EPS)

    def mixing(w, b, p):
        mixed = jnp.stack((x, y), axis=2).reshape(B, 2 * C, H, W)
        z = lax.conv_general_dilated(
            mixed, w, (1, 1), "SAME", feature_group_count=C,
            dimension_numbers=("NCHW", "OIHW", "NCHW"))
        z = z + b[None, :, None, None]
        z = jnp.where(z >= 0, z, p * z)
        return instnorm(z)

    z = mixing(*params["mix1"])
    for (w, b, p) in params["lin"]:
        z = jnp.einsum("oi,bihw->bohw", w, z) + b[None, :, None, None]
        z = jnp.where(z >= 0, z, p * z)
    if generate_masked:
        z = instnorm(mixing(*params["mix2"]) * z)
    return z


# ---------------------------------------------------------------------------
if __name__ == "__main__":
    # MixingMaskAttentionBlock(ch_in=8, ch_out=4, fin=[4, 8], fout=[8, 4], generate_masked=True)
    B, C, H, W = 2, 4, 16, 16            # x, y each carry C = ch_in // 2 = ch_out channels
    fin, fout = [4, 8], [8, 4]
    generate_masked = True

    key = jax.random.PRNGKey(0)
    kx, ky, kp = jax.random.split(key, 3)
    x = jax.random.normal(kx, (B, C, H, W), jnp.float32)
    y = jax.random.normal(ky, (B, C, H, W), jnp.float32)
    params = init_params(kp, C, fin, fout, generate_masked)

    out = mixing_mask_attention_block(x, y, params, fin, fout, generate_masked)
    out = jax.block_until_ready(out)

    ref = ref_forward(x, y, params, fin, fout, generate_masked)
    assert out.shape == (B, fout[-1], H, W)
    err = float(jnp.max(jnp.abs(out - ref)))
    assert jnp.allclose(out, ref, atol=1e-4, rtol=1e-4), err
    print("KERNEL_OK")
</pallas_src>

<mosaic_0001>
module attributes {stable_mosaic.version = 11 : i64} {
  func.func @kernel(%arg0: i32, %arg1: memref<4xf32, #tpu.memory_space<smem>>, %arg2: memref<2x2x4x256xf32, #tpu.memory_space<vmem>>, %arg3: memref<18x4x1xf32, #tpu.memory_space<vmem>>, %arg4: memref<4x1xf32, #tpu.memory_space<vmem>>, %arg5: memref<8x4xf32, #tpu.memory_space<vmem>>, %arg6: memref<8x1xf32, #tpu.memory_space<vmem>>, %arg7: memref<4x8xf32, #tpu.memory_space<vmem>>, %arg8: memref<4x1xf32, #tpu.memory_space<vmem>>, %arg9: memref<18x4x1xf32, #tpu.memory_space<vmem>>, %arg10: memref<4x1xf32, #tpu.memory_space<vmem>>, %arg11: memref<2x4x256xf32, #tpu.memory_space<vmem>>) attributes {dimension_semantics = [#tpu.dimension_semantics<arbitrary>], iteration_bounds = array<i64: 1>, scalar_prefetch = 0 : i64, scratch_operands = 0 : i64, tpu.core_type = #tpu.core_type<tc>, window_params = [{transform_indices = @transform_0, window_bounds = array<i64: 4>}, {pipeline_mode = #tpu.pipeline_mode<synchronous>, transform_indices = @transform_1, window_bounds = array<i64: 2, 2, 4, 256>}, {pipeline_mode = #tpu.pipeline_mode<synchronous>, transform_indices = @transform_2, window_bounds = array<i64: 18, 4, 1>}, {pipeline_mode = #tpu.pipeline_mode<synchronous>, transform_indices = @transform_3, window_bounds = array<i64: 4, 1>}, {pipeline_mode = #tpu.pipeline_mode<synchronous>, transform_indices = @transform_4, window_bounds = array<i64: 8, 4>}, {pipeline_mode = #tpu.pipeline_mode<synchronous>, transform_indices = @transform_5, window_bounds = array<i64: 8, 1>}, {pipeline_mode = #tpu.pipeline_mode<synchronous>, transform_indices = @transform_6, window_bounds = array<i64: 4, 8>}, {pipeline_mode = #tpu.pipeline_mode<synchronous>, transform_indices = @transform_7, window_bounds = array<i64: 4, 1>}, {pipeline_mode = #tpu.pipeline_mode<synchronous>, transform_indices = @transform_8, window_bounds = array<i64: 18, 4, 1>}, {pipeline_mode = #tpu.pipeline_mode<synchronous>, transform_indices = @transform_9, window_bounds = array<i64: 4, 1>}, {pipeline_mode = #tpu.pipeline_mode<synchronous>, transform_indices = @transform_10, window_bounds = array<i64: 2, 4, 256>}]} {
    %c0 = arith.constant 0 : index
    %c0_0 = arith.constant 0 : index
    %c0_1 = arith.constant 0 : index
    %c0_2 = arith.constant 0 : index
    %0 = vector.load %arg2[%c0, %c0_0, %c0_1, %c0_2] : memref<2x2x4x256xf32, #tpu.memory_space<vmem>>, vector<1x2x4x256xf32>
    %1 = vector.shape_cast %0 : vector<1x2x4x256xf32> to vector<2x4x256xf32>
    %c1 = arith.constant 1 : index
    %c0_3 = arith.constant 0 : index
    %c0_4 = arith.constant 0 : index
    %c0_5 = arith.constant 0 : index
    %2 = vector.load %arg2[%c1, %c0_3, %c0_4, %c0_5] : memref<2x2x4x256xf32, #tpu.memory_space<vmem>>, vector<1x2x4x256xf32>
    %3 = vector.shape_cast %2 : vector<1x2x4x256xf32> to vector<2x4x256xf32>
    %4 = tpu.iota {dimensions = array<i32: 2>} : vector<1x1x256xi32>
    %c16_i32 = arith.constant 16 : i32
    %c0_i32 = arith.constant 0 : i32
    %5 = arith.cmpi eq, %c16_i32, %c0_i32 : i32
    %c1_i32 = arith.constant 1 : i32
    %6 = arith.select %5, %c1_i32, %c16_i32 : i32
    %7 = vector.broadcast %6 : i32 to vector<1x1x256xi32>
    %8 = arith.remsi %4, %7 : vector<1x1x256xi32>
    %c0_i32_6 = arith.constant 0 : i32
    %9 = vector.broadcast %c0_i32_6 : i32 to vector<1x1x256xi32>
    %10 = arith.cmpi ne, %8, %9 : vector<1x1x256xi32>
    %c0_i32_7 = arith.constant 0 : i32
    %11 = vector.broadcast %c0_i32_7 : i32 to vector<1x1x256xi32>
    %12 = arith.cmpi slt, %8, %11 : vector<1x1x256xi32>
    %c0_i32_8 = arith.constant 0 : i32
    %13 = arith.cmpi slt, %6, %c0_i32_8 : i32
    %14 = vector.broadcast %13 : i1 to vector<1x1x256xi1>
    %15 = vector.broadcast %14 : vector<1x1x256xi1> to vector<1x1x256xi1>
    %16 = arith.xori %12, %15 : vector<1x1x256xi1>
    %17 = arith.andi %16, %10 : vector<1x1x256xi1>
    %18 = vector.broadcast %6 : i32 to vector<1x1x256xi32>
    %19 = arith.addi %8, %18 : vector<1x1x256xi32>
    %20 = arith.select %17, %19, %8 : vector<1x1x256xi1>, vector<1x1x256xi32>
    %c14_i32 = arith.constant 14 : i32
    %21 = vector.broadcast %c14_i32 : i32 to vector<1x1x256xi32>
    %22 = arith.cmpi sle, %20, %21 : vector<1x1x256xi32>
    %cst = arith.constant 0.000000e+00 : f32
    %23 = vector.shape_cast %22 : vector<1x1x256xi1> to vector<1x1x256xi1>
    %24 = vector.broadcast %23 : vector<1x1x256xi1> to vector<2x4x256xi1>
    %25 = vector.broadcast %cst : f32 to vector<2x4x256xf32>
    %26 = arith.select %24, %1, %25 : vector<2x4x256xi1>, vector<2x4x256xf32>
    %c1_i32_9 = arith.constant 1 : i32
    %27 = vector.broadcast %c1_i32_9 : i32 to vector<1x1x256xi32>
    %28 = arith.cmpi sge, %20, %27 : vector<1x1x256xi32>
    %cst_10 = arith.constant 0.000000e+00 : f32
    %29 = vector.shape_cast %28 : vector<1x1x256xi1> to vector<1x1x256xi1>
    %30 = vector.broadcast %29 : vector<1x1x256xi1> to vector<2x4x256xi1>
    %31 = vector.broadcast %cst_10 : f32 to vector<2x4x256xf32>
    %32 = arith.select %30, %1, %31 : vector<2x4x256xi1>, vector<2x4x256xf32>
    %cst_11 = arith.constant 0.000000e+00 : f32
    %33 = vector.broadcast %cst_11 : f32 to vector<2x4x17xf32>
    %34 = vector.extract_strided_slice %26 {offsets = [0, 0, 0], sizes = [2, 4, 239], strides = [1, 1, 1]} : vector<2x4x256xf32> to vector<2x4x239xf32>
    %35 = tpu.concatenate %33, %34 in 2 : vector<2x4x17xf32>, vector<2x4x239xf32> -> vector<2x4x256xf32>
    %cst_12 = arith.constant 0.000000e+00 : f32
    %36 = vector.broadcast %cst_12 : f32 to vector<2x4x16xf32>
    %37 = vector.extract_strided_slice %1 {offsets = [0, 0, 0], sizes = [2, 4, 240], strides = [1, 1, 1]} : vector<2x4x256xf32> to vector<2x4x240xf32>
    %38 = tpu.concatenate %36, %37 in 2 : vector<2x4x16xf32>, vector<2x4x240xf32> -> vector<2x4x256xf32>
    %cst_13 = arith.constant 0.000000e+00 : f32
    %39 = vector.broadcast %cst_13 : f32 to vector<2x4x15xf32>
    %40 = vector.extract_strided_slice %32 {offsets = [0, 0, 0], sizes = [2, 4, 241], strides = [1, 1, 1]} : vector<2x4x256xf32> to vector<2x4x241xf32>
    %41 = tpu.concatenate %39, %40 in 2 : vector<2x4x15xf32>, vector<2x4x241xf32> -> vector<2x4x256xf32>
    %cst_14 = arith.constant 0.000000e+00 : f32
    %42 = vector.broadcast %cst_14 : f32 to vector<2x4x1xf32>
    %43 = vector.extract_strided_slice %26 {offsets = [0, 0, 0], sizes = [2, 4, 255], strides = [1, 1, 1]} : vector<2x4x256xf32> to vector<2x4x255xf32>
    %44 = tpu.concatenate %42, %43 in 2 : vector<2x4x1xf32>, vector<2x4x255xf32> -> vector<2x4x256xf32>
    %cst_15 = arith.constant 0.000000e+00 : f32
    %45 = vector.broadcast %cst_15 : f32 to vector<2x4x1xf32>
    %46 = vector.extract_strided_slice %32 {offsets = [0, 0, 1], sizes = [2, 4, 255], strides = [1, 1, 1]} : vector<2x4x256xf32> to vector<2x4x255xf32>
    %47 = tpu.concatenate %46, %45 in 2 : vector<2x4x255xf32>, vector<2x4x1xf32> -> vector<2x4x256xf32>
    %cst_16 = arith.constant 0.000000e+00 : f32
    %48 = vector.broadcast %cst_16 : f32 to vector<2x4x15xf32>
    %49 = vector.extract_strided_slice %26 {offsets = [0, 0, 15], sizes = [2, 4, 241], strides = [1, 1, 1]} : vector<2x4x256xf32> to vector<2x4x241xf32>
    %50 = tpu.concatenate %49, %48 in 2 : vector<2x4x241xf32>, vector<2x4x15xf32> -> vector<2x4x256xf32>
    %cst_17 = arith.constant 0.000000e+00 : f32
    %51 = vector.broadcast %cst_17 : f32 to vector<2x4x16xf32>
    %52 = vector.extract_strided_slice %1 {offsets = [0, 0, 16], sizes = [2, 4, 240], strides = [1, 1, 1]} : vector<2x4x256xf32> to vector<2x4x240xf32>
    %53 = tpu.concatenate %52, %51 in 2 : vector<2x4x240xf32>, vector<2x4x16xf32> -> vector<2x4x256xf32>
    %cst_18 = arith.constant 0.000000e+00 : f32
    %54 = vector.broadcast %cst_18 : f32 to vector<2x4x17xf32>
    %55 = vector.extract_strided_slice %32 {offsets = [0, 0, 17], sizes = [2, 4, 239], strides = [1, 1, 1]} : vector<2x4x256xf32> to vector<2x4x239xf32>
    %56 = tpu.concatenate %55, %54 in 2 : vector<2x4x239xf32>, vector<2x4x17xf32> -> vector<2x4x256xf32>
    %c14_i32_19 = arith.constant 14 : i32
    %57 = vector.broadcast %c14_i32_19 : i32 to vector<1x1x256xi32>
    %58 = arith.cmpi sle, %20, %57 : vector<1x1x256xi32>
    %cst_20 = arith.constant 0.000000e+00 : f32
    %59 = vector.shape_cast %58 : vector<1x1x256xi1> to vector<1x1x256xi1>
    %60 = vector.broadcast %59 : vector<1x1x256xi1> to vector<2x4x256xi1>
    %61 = vector.broadcast %cst_20 : f32 to vector<2x4x256xf32>
    %62 = arith.select %60, %3, %61 : vector<2x4x256xi1>, vector<2x4x256xf32>
    %c1_i32_21 = arith.constant 1 : i32
    %63 = vector.broadcast %c1_i32_21 : i32 to vector<1x1x256xi32>
    %64 = arith.cmpi sge, %20, %63 : vector<1x1x256xi32>
    %cst_22 = arith.constant 0.000000e+00 : f32
    %65 = vector.shape_cast %64 : vector<1x1x256xi1> to vector<1x1x256xi1>
    %66 = vector.broadcast %65 : vector<1x1x256xi1> to vector<2x4x256xi1>
    %67 = vector.broadcast %cst_22 : f32 to vector<2x4x256xf32>
    %68 = arith.select %66, %3, %67 : vector<2x4x256xi1>, vector<2x4x256xf32>
    %cst_23 = arith.constant 0.000000e+00 : f32
    %69 = vector.broadcast %cst_23 : f32 to vector<2x4x17xf32>
    %70 = vector.extract_strided_slice %62 {offsets = [0, 0, 0], sizes = [2, 4, 239], strides = [1, 1, 1]} : vector<2x4x256xf32> to vector<2x4x239xf32>
    %71 = tpu.concatenate %69, %70 in 2 : vector<2x4x17xf32>, vector<2x4x239xf32> -> vector<2x4x256xf32>
    %cst_24 = arith.constant 0.000000e+00 : f32
    %72 = vector.broadcast %cst_24 : f32 to vector<2x4x16xf32>
    %73 = vector.extract_strided_slice %3 {offsets = [0, 0, 0], sizes = [2, 4, 240], strides = [1, 1, 1]} : vector<2x4x256xf32> to vector<2x4x240xf32>
    %74 = tpu.concatenate %72, %73 in 2 : vector<2x4x16xf32>, vector<2x4x240xf32> -> vector<2x4x256xf32>
    %cst_25 = arith.constant 0.000000e+00 : f32
    %75 = vector.broadcast %cst_25 : f32 to vector<2x4x15xf32>
    %76 = vector.extract_strided_slice %68 {offsets = [0, 0, 0], sizes = [2, 4, 241], strides = [1, 1, 1]} : vector<2x4x256xf32> to vector<2x4x241xf32>
    %77 = tpu.concatenate %75, %76 in 2 : vector<2x4x15xf32>, vector<2x4x241xf32> -> vector<2x4x256xf32>
    %cst_26 = arith.constant 0.000000e+00 : f32
    %78 = vector.broadcast %cst_26 : f32 to vector<2x4x1xf32>
    %79 = vector.extract_strided_slice %62 {offsets = [0, 0, 0], sizes = [2, 4, 255], strides = [1, 1, 1]} : vector<2x4x256xf32> to vector<2x4x255xf32>
    %80 = tpu.concatenate %78, %79 in 2 : vector<2x4x1xf32>, vector<2x4x255xf32> -> vector<2x4x256xf32>
    %cst_27 = arith.constant 0.000000e+00 : f32
    %81 = vector.broadcast %cst_27 : f32 to vector<2x4x1xf32>
    %82 = vector.extract_strided_slice %68 {offsets = [0, 0, 1], sizes = [2, 4, 255], strides = [1, 1, 1]} : vector<2x4x256xf32> to vector<2x4x255xf32>
    %83 = tpu.concatenate %82, %81 in 2 : vector<2x4x255xf32>, vector<2x4x1xf32> -> vector<2x4x256xf32>
    %cst_28 = arith.constant 0.000000e+00 : f32
    %84 = vector.broadcast %cst_28 : f32 to vector<2x4x15xf32>
    %85 = vector.extract_strided_slice %62 {offsets = [0, 0, 15], sizes = [2, 4, 241], strides = [1, 1, 1]} : vector<2x4x256xf32> to vector<2x4x241xf32>
    %86 = tpu.concatenate %85, %84 in 2 : vector<2x4x241xf32>, vector<2x4x15xf32> -> vector<2x4x256xf32>
    %cst_29 = arith.constant 0.000000e+00 : f32
    %87 = vector.broadcast %cst_29 : f32 to vector<2x4x16xf32>
    %88 = vector.extract_strided_slice %3 {offsets = [0, 0, 16], sizes = [2, 4, 240], strides = [1, 1, 1]} : vector<2x4x256xf32> to vector<2x4x240xf32>
    %89 = tpu.concatenate %88, %87 in 2 : vector<2x4x240xf32>, vector<2x4x16xf32> -> vector<2x4x256xf32>
    %cst_30 = arith.constant 0.000000e+00 : f32
    %90 = vector.broadcast %cst_30 : f32 to vector<2x4x17xf32>
    %91 = vector.extract_strided_slice %68 {offsets = [0, 0, 17], sizes = [2, 4, 239], strides = [1, 1, 1]} : vector<2x4x256xf32> to vector<2x4x239xf32>
    %92 = tpu.concatenate %91, %90 in 2 : vector<2x4x239xf32>, vector<2x4x17xf32> -> vector<2x4x256xf32>
    %c0_31 = arith.constant 0 : index
    %93 = memref.load %arg1[%c0_31] : memref<4xf32, #tpu.memory_space<smem>>
    %c0_32 = arith.constant 0 : index
    %c0_33 = arith.constant 0 : index
    %c0_34 = arith.constant 0 : index
    %94 = vector.load %arg3[%c0_32, %c0_33, %c0_34] : memref<18x4x1xf32, #tpu.memory_space<vmem>>, vector<1x4x1xf32>
    %95 = vector.shape_cast %94 : vector<1x4x1xf32> to vector<4x1xf32>
    %96 = vector.shape_cast %95 : vector<4x1xf32> to vector<1x4x1xf32>
    %97 = vector.broadcast %96 : vector<1x4x1xf32> to vector<2x4x256xf32>
    %98 = arith.mulf %97, %35 : vector<2x4x256xf32>
    %c9 = arith.constant 9 : index
    %c0_35 = arith.constant 0 : index
    %c0_36 = arith.constant 0 : index
    %99 = vector.load %arg3[%c9, %c0_35, %c0_36] : memref<18x4x1xf32, #tpu.memory_space<vmem>>, vector<1x4x1xf32>
    %100 = vector.shape_cast %99 : vector<1x4x1xf32> to vector<4x1xf32>
    %101 = vector.shape_cast %100 : vector<4x1xf32> to vector<1x4x1xf32>
    %102 = vector.broadcast %101 : vector<1x4x1xf32> to vector<2x4x256xf32>
    %103 = arith.mulf %102, %71 : vector<2x4x256xf32>
    %104 = arith.addf %98, %103 : vector<2x4x256xf32>
    %c1_37 = arith.constant 1 : index
    %c0_38 = arith.constant 0 : index
    %c0_39 = arith.constant 0 : index
    %105 = vector.load %arg3[%c1_37, %c0_38, %c0_39] : memref<18x4x1xf32, #tpu.memory_space<vmem>>, vector<1x4x1xf32>
    %106 = vector.shape_cast %105 : vector<1x4x1xf32> to vector<4x1xf32>
    %107 = vector.shape_cast %106 : vector<4x1xf32> to vector<1x4x1xf32>
    %108 = vector.broadcast %107 : vector<1x4x1xf32> to vector<2x4x256xf32>
    %109 = arith.mulf %108, %38 : vector<2x4x256xf32>
    %110 = arith.addf %104, %109 : vector<2x4x256xf32>
    %c10 = arith.constant 10 : index
    %c0_40 = arith.constant 0 : index
    %c0_41 = arith.constant 0 : index
    %111 = vector.load %arg3[%c10, %c0_40, %c0_41] : memref<18x4x1xf32, #tpu.memory_space<vmem>>, vector<1x4x1xf32>
    %112 = vector.shape_cast %111 : vector<1x4x1xf32> to vector<4x1xf32>
    %113 = vector.shape_cast %112 : vector<4x1xf32> to vector<1x4x1xf32>
    %114 = vector.broadcast %113 : vector<1x4x1xf32> to vector<2x4x256xf32>
    %115 = arith.mulf %114, %74 : vector<2x4x256xf32>
    %116 = arith.addf %110, %115 : vector<2x4x256xf32>
    %c2 = arith.constant 2 : index
    %c0_42 = arith.constant 0 : index
    %c0_43 = arith.constant 0 : index
    %117 = vector.load %arg3[%c2, %c0_42, %c0_43] : memref<18x4x1xf32, #tpu.memory_space<vmem>>, vector<1x4x1xf32>
    %118 = vector.shape_cast %117 : vector<1x4x1xf32> to vector<4x1xf32>
    %119 = vector.shape_cast %118 : vector<4x1xf32> to vector<1x4x1xf32>
    %120 = vector.broadcast %119 : vector<1x4x1xf32> to vector<2x4x256xf32>
    %121 = arith.mulf %120, %41 : vector<2x4x256xf32>
    %122 = arith.addf %116, %121 : vector<2x4x256xf32>
    %c11 = arith.constant 11 : index
    %c0_44 = arith.constant 0 : index
    %c0_45 = arith.constant 0 : index
    %123 = vector.load %arg3[%c11, %c0_44, %c0_45] : memref<18x4x1xf32, #tpu.memory_space<vmem>>, vector<1x4x1xf32>
    %124 = vector.shape_cast %123 : vector<1x4x1xf32> to vector<4x1xf32>
    %125 = vector.shape_cast %124 : vector<4x1xf32> to vector<1x4x1xf32>
    %126 = vector.broadcast %125 : vector<1x4x1xf32> to vector<2x4x256xf32>
    %127 = arith.mulf %126, %77 : vector<2x4x256xf32>
    %128 = arith.addf %122, %127 : vector<2x4x256xf32>
    %c3 = arith.constant 3 : index
    %c0_46 = arith.constant 0 : index
    %c0_47 = arith.constant 0 : index
    %129 = vector.load %arg3[%c3, %c0_46, %c0_47] : memref<18x4x1xf32, #tpu.memory_space<vmem>>, vector<1x4x1xf32>
    %130 = vector.shape_cast %129 : vector<1x4x1xf32> to vector<4x1xf32>
    %131 = vector.shape_cast %130 : vector<4x1xf32> to vector<1x4x1xf32>
    %132 = vector.broadcast %131 : vector<1x4x1xf32> to vector<2x4x256xf32>
    %133 = arith.mulf %132, %44 : vector<2x4x256xf32>
    %134 = arith.addf %128, %133 : vector<2x4x256xf32>
    %c12 = arith.constant 12 : index
    %c0_48 = arith.constant 0 : index
    %c0_49 = arith.constant 0 : index
    %135 = vector.load %arg3[%c12, %c0_48, %c0_49] : memref<18x4x1xf32, #tpu.memory_space<vmem>>, vector<1x4x1xf32>
    %136 = vector.shape_cast %135 : vector<1x4x1xf32> to vector<4x1xf32>
    %137 = vector.shape_cast %136 : vector<4x1xf32> to vector<1x4x1xf32>
    %138 = vector.broadcast %137 : vector<1x4x1xf32> to vector<2x4x256xf32>
    %139 = arith.mulf %138, %80 : vector<2x4x256xf32>
    %140 = arith.addf %134, %139 : vector<2x4x256xf32>
    %c4 = arith.constant 4 : index
    %c0_50 = arith.constant 0 : index
    %c0_51 = arith.constant 0 : index
    %141 = vector.load %arg3[%c4, %c0_50, %c0_51] : memref<18x4x1xf32, #tpu.memory_space<vmem>>, vector<1x4x1xf32>
    %142 = vector.shape_cast %141 : vector<1x4x1xf32> to vector<4x1xf32>
    %143 = vector.shape_cast %142 : vector<4x1xf32> to vector<1x4x1xf32>
    %144 = vector.broadcast %143 : vector<1x4x1xf32> to vector<2x4x256xf32>
    %145 = arith.mulf %144, %1 : vector<2x4x256xf32>
    %146 = arith.addf %140, %145 : vector<2x4x256xf32>
    %c13 = arith.constant 13 : index
    %c0_52 = arith.constant 0 : index
    %c0_53 = arith.constant 0 : index
    %147 = vector.load %arg3[%c13, %c0_52, %c0_53] : memref<18x4x1xf32, #tpu.memory_space<vmem>>, vector<1x4x1xf32>
    %148 = vector.shape_cast %147 : vector<1x4x1xf32> to vector<4x1xf32>
    %149 = vector.shape_cast %148 : vector<4x1xf32> to vector<1x4x1xf32>
    %150 = vector.broadcast %149 : vector<1x4x1xf32> to vector<2x4x256xf32>
    %151 = arith.mulf %150, %3 : vector<2x4x256xf32>
    %152 = arith.addf %146, %151 : vector<2x4x256xf32>
    %c5 = arith.constant 5 : index
    %c0_54 = arith.constant 0 : index
    %c0_55 = arith.constant 0 : index
    %153 = vector.load %arg3[%c5, %c0_54, %c0_55] : memref<18x4x1xf32, #tpu.memory_space<vmem>>, vector<1x4x1xf32>
    %154 = vector.shape_cast %153 : vector<1x4x1xf32> to vector<4x1xf32>
    %155 = vector.shape_cast %154 : vector<4x1xf32> to vector<1x4x1xf32>
    %156 = vector.broadcast %155 : vector<1x4x1xf32> to vector<2x4x256xf32>
    %157 = arith.mulf %156, %47 : vector<2x4x256xf32>
    %158 = arith.addf %152, %157 : vector<2x4x256xf32>
    %c14 = arith.constant 14 : index
    %c0_56 = arith.constant 0 : index
    %c0_57 = arith.constant 0 : index
    %159 = vector.load %arg3[%c14, %c0_56, %c0_57] : memref<18x4x1xf32, #tpu.memory_space<vmem>>, vector<1x4x1xf32>
    %160 = vector.shape_cast %159 : vector<1x4x1xf32> to vector<4x1xf32>
    %161 = vector.shape_cast %160 : vector<4x1xf32> to vector<1x4x1xf32>
    %162 = vector.broadcast %161 : vector<1x4x1xf32> to vector<2x4x256xf32>
    %163 = arith.mulf %162, %83 : vector<2x4x256xf32>
    %164 = arith.addf %158, %163 : vector<2x4x256xf32>
    %c6 = arith.constant 6 : index
    %c0_58 = arith.constant 0 : index
    %c0_59 = arith.constant 0 : index
    %165 = vector.load %arg3[%c6, %c0_58, %c0_59] : memref<18x4x1xf32, #tpu.memory_space<vmem>>, vector<1x4x1xf32>
    %166 = vector.shape_cast %165 : vector<1x4x1xf32> to vector<4x1xf32>
    %167 = vector.shape_cast %166 : vector<4x1xf32> to vector<1x4x1xf32>
    %168 = vector.broadcast %167 : vector<1x4x1xf32> to vector<2x4x256xf32>
    %169 = arith.mulf %168, %50 : vector<2x4x256xf32>
    %170 = arith.addf %164, %169 : vector<2x4x256xf32>
    %c15 = arith.constant 15 : index
    %c0_60 = arith.constant 0 : index
    %c0_61 = arith.constant 0 : index
    %171 = vector.load %arg3[%c15, %c0_60, %c0_61] : memref<18x4x1xf32, #tpu.memory_space<vmem>>, vector<1x4x1xf32>
    %172 = vector.shape_cast %171 : vector<1x4x1xf32> to vector<4x1xf32>
    %173 = vector.shape_cast %172 : vector<4x1xf32> to vector<1x4x1xf32>
    %174 = vector.broadcast %173 : vector<1x4x1xf32> to vector<2x4x256xf32>
    %175 = arith.mulf %174, %86 : vector<2x4x256xf32>
    %176 = arith.addf %170, %175 : vector<2x4x256xf32>
    %c7 = arith.constant 7 : index
    %c0_62 = arith.constant 0 : index
    %c0_63 = arith.constant 0 : index
    %177 = vector.load %arg3[%c7, %c0_62, %c0_63] : memref<18x4x1xf32, #tpu.memory_space<vmem>>, vector<1x4x1xf32>
    %178 = vector.shape_cast %177 : vector<1x4x1xf32> to vector<4x1xf32>
    %179 = vector.shape_cast %178 : vector<4x1xf32> to vector<1x4x1xf32>
    %180 = vector.broadcast %179 : vector<1x4x1xf32> to vector<2x4x256xf32>
    %181 = arith.mulf %180, %53 : vector<2x4x256xf32>
    %182 = arith.addf %176, %181 : vector<2x4x256xf32>
    %c16 = arith.constant 16 : index
    %c0_64 = arith.constant 0 : index
    %c0_65 = arith.constant 0 : index
    %183 = vector.load %arg3[%c16, %c0_64, %c0_65] : memref<18x4x1xf32, #tpu.memory_space<vmem>>, vector<1x4x1xf32>
    %184 = vector.shape_cast %183 : vector<1x4x1xf32> to vector<4x1xf32>
    %185 = vector.shape_cast %184 : vector<4x1xf32> to vector<1x4x1xf32>
    %186 = vector.broadcast %185 : vector<1x4x1xf32> to vector<2x4x256xf32>
    %187 = arith.mulf %186, %89 : vector<2x4x256xf32>
    %188 = arith.addf %182, %187 : vector<2x4x256xf32>
    %c8 = arith.constant 8 : index
    %c0_66 = arith.constant 0 : index
    %c0_67 = arith.constant 0 : index
    %189 = vector.load %arg3[%c8, %c0_66, %c0_67] : memref<18x4x1xf32, #tpu.memory_space<vmem>>, vector<1x4x1xf32>
    %190 = vector.shape_cast %189 : vector<1x4x1xf32> to vector<4x1xf32>
    %191 = vector.shape_cast %190 : vector<4x1xf32> to vector<1x4x1xf32>
    %192 = vector.broadcast %191 : vector<1x4x1xf32> to vector<2x4x256xf32>
    %193 = arith.mulf %192, %56 : vector<2x4x256xf32>
    %194 = arith.addf %188, %193 : vector<2x4x256xf32>
    %c17 = arith.constant 17 : index
    %c0_68 = arith.constant 0 : index
    %c0_69 = arith.constant 0 : index
    %195 = vector.load %arg3[%c17, %c0_68, %c0_69] : memref<18x4x1xf32, #tpu.memory_space<vmem>>, vector<1x4x1xf32>
    %196 = vector.shape_cast %195 : vector<1x4x1xf32> to vector<4x1xf32>
    %197 = vector.shape_cast %196 : vector<4x1xf32> to vector<1x4x1xf32>
    %198 = vector.broadcast %197 : vector<1x4x1xf32> to vector<2x4x256xf32>
    %199 = arith.mulf %198, %92 : vector<2x4x256xf32>
    %200 = arith.addf %194, %199 : vector<2x4x256xf32>
    %c0_70 = arith.constant 0 : index
    %c0_71 = arith.constant 0 : index
    %201 = vector.load %arg4[%c0_70, %c0_71] : memref<4x1xf32, #tpu.memory_space<vmem>>, vector<4x1xf32>
    %202 = vector.shape_cast %201 : vector<4x1xf32> to vector<1x4x1xf32>
    %203 = vector.broadcast %202 : vector<1x4x1xf32> to vector<2x4x256xf32>
    %204 = arith.addf %200, %203 : vector<2x4x256xf32>
    %cst_72 = arith.constant 0.000000e+00 : f32
    %205 = vector.broadcast %cst_72 : f32 to vector<2x4x256xf32>
    %206 = arith.cmpf oge, %204, %205 : vector<2x4x256xf32>
    %207 = vector.broadcast %93 : f32 to vector<2x4x256xf32>
    %208 = arith.mulf %207, %204 : vector<2x4x256xf32>
    %209 = arith.select %206, %204, %208 : vector<2x4x256xi1>, vector<2x4x256xf32>
    %cst_73 = arith.constant dense<0.000000e+00> : vector<2x4xf32>
    %210 = vector.multi_reduction <add>, %209, %cst_73 [2] : vector<2x4x256xf32> to vector<2x4xf32>
    %211 = vector.shape_cast %210 : vector<2x4xf32> to vector<2x4x1xf32>
    %cst_74 = arith.constant 2.560000e+02 : f32
    %212 = vector.broadcast %cst_74 : f32 to vector<2x4x1xf32>
    %213 = arith.divf %211, %212 : vector<2x4x1xf32>
    %214 = arith.mulf %209, %209 : vector<2x4x256xf32>
    %cst_75 = arith.constant dense<0.000000e+00> : vector<2x4xf32>
    %215 = vector.multi_reduction <add>, %214, %cst_75 [2] : vector<2x4x256xf32> to vector<2x4xf32>
    %216 = vector.shape_cast %215 : vector<2x4xf32> to vector<2x4x1xf32>
    %cst_76 = arith.constant 2.560000e+02 : f32
    %217 = vector.broadcast %cst_76 : f32 to vector<2x4x1xf32>
    %218 = arith.divf %216, %217 : vector<2x4x1xf32>
    %219 = arith.mulf %213, %213 : vector<2x4x1xf32>
    %220 = arith.subf %218, %219 : vector<2x4x1xf32>
    %cst_77 = arith.constant 0.000000e+00 : f32
    %221 = vector.broadcast %cst_77 : f32 to vector<2x4x1xf32>
    %222 = arith.maximumf %220, %221 : vector<2x4x1xf32>
    %223 = vector.broadcast %213 : vector<2x4x1xf32> to vector<2x4x256xf32>
    %224 = arith.subf %209, %223 : vector<2x4x256xf32>
    %cst_78 = arith.constant 9.99999974E-6 : f32
    %225 = vector.broadcast %cst_78 : f32 to vector<2x4x1xf32>
    %226 = arith.addf %222, %225 : vector<2x4x1xf32>
    %227 = math.rsqrt %226 : vector<2x4x1xf32>
    %228 = vector.broadcast %227 : vector<2x4x1xf32> to vector<2x4x256xf32>
    %229 = arith.mulf %224, %228 : vector<2x4x256xf32>
    %c0_79 = arith.constant 0 : index
    %c0_80 = arith.constant 0 : index
    %230 = vector.load %arg5[%c0_79, %c0_80] : memref<8x4xf32, #tpu.memory_space<vmem>>, vector<8x4xf32>
    %c0_81 = arith.constant 0 : index
    %c0_82 = arith.constant 0 : index
    %231 = vector.load %arg6[%c0_81, %c0_82] : memref<8x1xf32, #tpu.memory_space<vmem>>, vector<8x1xf32>
    %c1_83 = arith.constant 1 : index
    %232 = memref.load %arg1[%c1_83] : memref<4xf32, #tpu.memory_space<smem>>
    %233 = vector.extract_strided_slice %229 {offsets = [0, 0, 0], sizes = [1, 4, 256], strides = [1, 1, 1]} : vector<2x4x256xf32> to vector<1x4x256xf32>
    %234 = vector.shape_cast %233 : vector<1x4x256xf32> to vector<4x256xf32>
    %cst_84 = arith.constant dense<0.000000e+00> : vector<8x256xf32>
    %235 = tpu.matmul %230, %234, %cst_84 {dimension_numbers = #tpu.dot_dimension_numbers<[1], [0], [0], [1], [0, 0, 1, 1], [], []>} : vector<8x4xf32>, vector<4x256xf32>, vector<8x256xf32> -> vector<8x256xf32>
    %236 = vector.broadcast %231 : vector<8x1xf32> to vector<8x256xf32>
    %237 = arith.addf %235, %236 : vector<8x256xf32>
    %238 = vector.extract_strided_slice %229 {offsets = [1, 0, 0], sizes = [1, 4, 256], strides = [1, 1, 1]} : vector<2x4x256xf32> to vector<1x4x256xf32>
    %239 = vector.shape_cast %238 : vector<1x4x256xf32> to vector<4x256xf32>
    %cst_85 = arith.constant dense<0.000000e+00> : vector<8x256xf32>
    %240 = tpu.matmul %230, %239, %cst_85 {dimension_numbers = #tpu.dot_dimension_numbers<[1], [0], [0], [1], [0, 0, 1, 1], [], []>} : vector<8x4xf32>, vector<4x256xf32>, vector<8x256xf32> -> vector<8x256xf32>
    %241 = vector.broadcast %231 : vector<8x1xf32> to vector<8x256xf32>
    %242 = arith.addf %240, %241 : vector<8x256xf32>
    %243 = vector.shape_cast %237 : vector<8x256xf32> to vector<1x8x256xf32>
    %244 = vector.shape_cast %242 : vector<8x256xf32> to vector<1x8x256xf32>
    %245 = tpu.concatenate %243, %244 in 0 : vector<1x8x256xf32>, vector<1x8x256xf32> -> vector<2x8x256xf32>
    %cst_86 = arith.constant 0.000000e+00 : f32
    %246 = vector.broadcast %cst_86 : f32 to vector<2x8x256xf32>
    %247 = arith.cmpf oge, %245, %246 : vector<2x8x256xf32>
    %248 = vector.broadcast %232 : f32 to vector<2x8x256xf32>
    %249 = arith.mulf %248, %245 : vector<2x8x256xf32>
    %250 = arith.select %247, %245, %249 : vector<2x8x256xi1>, vector<2x8x256xf32>
    %c0_87 = arith.constant 0 : index
    %c0_88 = arith.constant 0 : index
    %251 = vector.load %arg7[%c0_87, %c0_88] : memref<4x8xf32, #tpu.memory_space<vmem>>, vector<4x8xf32>
    %c0_89 = arith.constant 0 : index
    %c0_90 = arith.constant 0 : index
    %252 = vector.load %arg8[%c0_89, %c0_90] : memref<4x1xf32, #tpu.memory_space<vmem>>, vector<4x1xf32>
    %c2_91 = arith.constant 2 : index
    %253 = memref.load %arg1[%c2_91] : memref<4xf32, #tpu.memory_space<smem>>
    %254 = vector.extract_strided_slice %250 {offsets = [0, 0, 0], sizes = [1, 8, 256], strides = [1, 1, 1]} : vector<2x8x256xf32> to vector<1x8x256xf32>
    %255 = vector.shape_cast %254 : vector<1x8x256xf32> to vector<8x256xf32>
    %cst_92 = arith.constant dense<0.000000e+00> : vector<4x256xf32>
    %256 = tpu.matmul %251, %255, %cst_92 {dimension_numbers = #tpu.dot_dimension_numbers<[1], [0], [0], [1], [0, 0, 1, 1], [], []>} : vector<4x8xf32>, vector<8x256xf32>, vector<4x256xf32> -> vector<4x256xf32>
    %257 = vector.broadcast %252 : vector<4x1xf32> to vector<4x256xf32>
    %258 = arith.addf %256, %257 : vector<4x256xf32>
    %259 = vector.extract_strided_slice %250 {offsets = [1, 0, 0], sizes = [1, 8, 256], strides = [1, 1, 1]} : vector<2x8x256xf32> to vector<1x8x256xf32>
    %260 = vector.shape_cast %259 : vector<1x8x256xf32> to vector<8x256xf32>
    %cst_93 = arith.constant dense<0.000000e+00> : vector<4x256xf32>
    %261 = tpu.matmul %251, %260, %cst_93 {dimension_numbers = #tpu.dot_dimension_numbers<[1], [0], [0], [1], [0, 0, 1, 1], [], []>} : vector<4x8xf32>, vector<8x256xf32>, vector<4x256xf32> -> vector<4x256xf32>
    %262 = vector.broadcast %252 : vector<4x1xf32> to vector<4x256xf32>
    %263 = arith.addf %261, %262 : vector<4x256xf32>
    %264 = vector.shape_cast %258 : vector<4x256xf32> to vector<1x4x256xf32>
    %265 = vector.shape_cast %263 : vector<4x256xf32> to vector<1x4x256xf32>
    %266 = tpu.concatenate %264, %265 in 0 : vector<1x4x256xf32>, vector<1x4x256xf32> -> vector<2x4x256xf32>
    %cst_94 = arith.constant 0.000000e+00 : f32
    %267 = vector.broadcast %cst_94 : f32 to vector<2x4x256xf32>
    %268 = arith.cmpf oge, %266, %267 : vector<2x4x256xf32>
    %269 = vector.broadcast %253 : f32 to vector<2x4x256xf32>
    %270 = arith.mulf %269, %266 : vector<2x4x256xf32>
    %271 = arith.select %268, %266, %270 : vector<2x4x256xi1>, vector<2x4x256xf32>
    %c3_95 = arith.constant 3 : index
    %272 = memref.load %arg1[%c3_95] : memref<4xf32, #tpu.memory_space<smem>>
    %c0_96 = arith.constant 0 : index
    %c0_97 = arith.constant 0 : index
    %c0_98 = arith.constant 0 : index
    %273 = vector.load %arg9[%c0_96, %c0_97, %c0_98] : memref<18x4x1xf32, #tpu.memory_space<vmem>>, vector<1x4x1xf32>
    %274 = vector.shape_cast %273 : vector<1x4x1xf32> to vector<4x1xf32>
    %275 = vector.shape_cast %274 : vector<4x1xf32> to vector<1x4x1xf32>
    %276 = vector.broadcast %275 : vector<1x4x1xf32> to vector<2x4x256xf32>
    %277 = arith.mulf %276, %35 : vector<2x4x256xf32>
    %c9_99 = arith.constant 9 : index
    %c0_100 = arith.constant 0 : index
    %c0_101 = arith.constant 0 : index
    %278 = vector.load %arg9[%c9_99, %c0_100, %c0_101] : memref<18x4x1xf32, #tpu.memory_space<vmem>>, vector<1x4x1xf32>
    %279 = vector.shape_cast %278 : vector<1x4x1xf32> to vector<4x1xf32>
    %280 = vector.shape_cast %279 : vector<4x1xf32> to vector<1x4x1xf32>
    %281 = vector.broadcast %280 : vector<1x4x1xf32> to vector<2x4x256xf32>
    %282 = arith.mulf %281, %71 : vector<2x4x256xf32>
    %283 = arith.addf %277, %282 : vector<2x4x256xf32>
    %c1_102 = arith.constant 1 : index
    %c0_103 = arith.constant 0 : index
    %c0_104 = arith.constant 0 : index
    %284 = vector.load %arg9[%c1_102, %c0_103, %c0_104] : memref<18x4x1xf32, #tpu.memory_space<vmem>>, vector<1x4x1xf32>
    %285 = vector.shape_cast %284 : vector<1x4x1xf32> to vector<4x1xf32>
    %286 = vector.shape_cast %285 : vector<4x1xf32> to vector<1x4x1xf32>
    %287 = vector.broadcast %286 : vector<1x4x1xf32> to vector<2x4x256xf32>
    %288 = arith.mulf %287, %38 : vector<2x4x256xf32>
    %289 = arith.addf %283, %288 : vector<2x4x256xf32>
    %c10_105 = arith.constant 10 : index
    %c0_106 = arith.constant 0 : index
    %c0_107 = arith.constant 0 : index
    %290 = vector.load %arg9[%c10_105, %c0_106, %c0_107] : memref<18x4x1xf32, #tpu.memory_space<vmem>>, vector<1x4x1xf32>
    %291 = vector.shape_cast %290 : vector<1x4x1xf32> to vector<4x1xf32>
    %292 = vector.shape_cast %291 : vector<4x1xf32> to vector<1x4x1xf32>
    %293 = vector.broadcast %292 : vector<1x4x1xf32> to vector<2x4x256xf32>
    %294 = arith.mulf %293, %74 : vector<2x4x256xf32>
    %295 = arith.addf %289, %294 : vector<2x4x256xf32>
    %c2_108 = arith.constant 2 : index
    %c0_109 = arith.constant 0 : index
    %c0_110 = arith.constant 0 : index
    %296 = vector.load %arg9[%c2_108, %c0_109, %c0_110] : memref<18x4x1xf32, #tpu.memory_space<vmem>>, vector<1x4x1xf32>
    %297 = vector.shape_cast %296 : vector<1x4x1xf32> to vector<4x1xf32>
    %298 = vector.shape_cast %297 : vector<4x1xf32> to vector<1x4x1xf32>
    %299 = vector.broadcast %298 : vector<1x4x1xf32> to vector<2x4x256xf32>
    %300 = arith.mulf %299, %41 : vector<2x4x256xf32>
    %301 = arith.addf %295, %300 : vector<2x4x256xf32>
    %c11_111 = arith.constant 11 : index
    %c0_112 = arith.constant 0 : index
    %c0_113 = arith.constant 0 : index
    %302 = vector.load %arg9[%c11_111, %c0_112, %c0_113] : memref<18x4x1xf32, #tpu.memory_space<vmem>>, vector<1x4x1xf32>
    %303 = vector.shape_cast %302 : vector<1x4x1xf32> to vector<4x1xf32>
    %304 = vector.shape_cast %303 : vector<4x1xf32> to vector<1x4x1xf32>
    %305 = vector.broadcast %304 : vector<1x4x1xf32> to vector<2x4x256xf32>
    %306 = arith.mulf %305, %77 : vector<2x4x256xf32>
    %307 = arith.addf %301, %306 : vector<2x4x256xf32>
    %c3_114 = arith.constant 3 : index
    %c0_115 = arith.constant 0 : index
    %c0_116 = arith.constant 0 : index
    %308 = vector.load %arg9[%c3_114, %c0_115, %c0_116] : memref<18x4x1xf32, #tpu.memory_space<vmem>>, vector<1x4x1xf32>
    %309 = vector.shape_cast %308 : vector<1x4x1xf32> to vector<4x1xf32>
    %310 = vector.shape_cast %309 : vector<4x1xf32> to vector<1x4x1xf32>
    %311 = vector.broadcast %310 : vector<1x4x1xf32> to vector<2x4x256xf32>
    %312 = arith.mulf %311, %44 : vector<2x4x256xf32>
    %313 = arith.addf %307, %312 : vector<2x4x256xf32>
    %c12_117 = arith.constant 12 : index
    %c0_118 = arith.constant 0 : index
    %c0_119 = arith.constant 0 : index
    %314 = vector.load %arg9[%c12_117, %c0_118, %c0_119] : memref<18x4x1xf32, #tpu.memory_space<vmem>>, vector<1x4x1xf32>
    %315 = vector.shape_cast %314 : vector<1x4x1xf32> to vector<4x1xf32>
    %316 = vector.shape_cast %315 : vector<4x1xf32> to vector<1x4x1xf32>
    %317 = vector.broadcast %316 : vector<1x4x1xf32> to vector<2x4x256xf32>
    %318 = arith.mulf %317, %80 : vector<2x4x256xf32>
    %319 = arith.addf %313, %318 : vector<2x4x256xf32>
    %c4_120 = arith.constant 4 : index
    %c0_121 = arith.constant 0 : index
    %c0_122 = arith.constant 0 : index
    %320 = vector.load %arg9[%c4_120, %c0_121, %c0_122] : memref<18x4x1xf32, #tpu.memory_space<vmem>>, vector<1x4x1xf32>
    %321 = vector.shape_cast %320 : vector<1x4x1xf32> to vector<4x1xf32>
    %322 = vector.shape_cast %321 : vector<4x1xf32> to vector<1x4x1xf32>
    %323 = vector.broadcast %322 : vector<1x4x1xf32> to vector<2x4x256xf32>
    %324 = arith.mulf %323, %1 : vector<2x4x256xf32>
    %325 = arith.addf %319, %324 : vector<2x4x256xf32>
    %c13_123 = arith.constant 13 : index
    %c0_124 = arith.constant 0 : index
    %c0_125 = arith.constant 0 : index
    %326 = vector.load %arg9[%c13_123, %c0_124, %c0_125] : memref<18x4x1xf32, #tpu.memory_space<vmem>>, vector<1x4x1xf32>
    %327 = vector.shape_cast %326 : vector<1x4x1xf32> to vector<4x1xf32>
    %328 = vector.shape_cast %327 : vector<4x1xf32> to vector<1x4x1xf32>
    %329 = vector.broadcast %328 : vector<1x4x1xf32> to vector<2x4x256xf32>
    %330 = arith.mulf %329, %3 : vector<2x4x256xf32>
    %331 = arith.addf %325, %330 : vector<2x4x256xf32>
    %c5_126 = arith.constant 5 : index
    %c0_127 = arith.constant 0 : index
    %c0_128 = arith.constant 0 : index
    %332 = vector.load %arg9[%c5_126, %c0_127, %c0_128] : memref<18x4x1xf32, #tpu.memory_space<vmem>>, vector<1x4x1xf32>
    %333 = vector.shape_cast %332 : vector<1x4x1xf32> to vector<4x1xf32>
    %334 = vector.shape_cast %333 : vector<4x1xf32> to vector<1x4x1xf32>
    %335 = vector.broadcast %334 : vector<1x4x1xf32> to vector<2x4x256xf32>
    %336 = arith.mulf %335, %47 : vector<2x4x256xf32>
    %337 = arith.addf %331, %336 : vector<2x4x256xf32>
    %c14_129 = arith.constant 14 : index
    %c0_130 = arith.constant 0 : index
    %c0_131 = arith.constant 0 : index
    %338 = vector.load %arg9[%c14_129, %c0_130, %c0_131] : memref<18x4x1xf32, #tpu.memory_space<vmem>>, vector<1x4x1xf32>
    %339 = vector.shape_cast %338 : vector<1x4x1xf32> to vector<4x1xf32>
    %340 = vector.shape_cast %339 : vector<4x1xf32> to vector<1x4x1xf32>
    %341 = vector.broadcast %340 : vector<1x4x1xf32> to vector<2x4x256xf32>
    %342 = arith.mulf %341, %83 : vector<2x4x256xf32>
    %343 = arith.addf %337, %342 : vector<2x4x256xf32>
    %c6_132 = arith.constant 6 : index
    %c0_133 = arith.constant 0 : index
    %c0_134 = arith.constant 0 : index
    %344 = vector.load %arg9[%c6_132, %c0_133, %c0_134] : memref<18x4x1xf32, #tpu.memory_space<vmem>>, vector<1x4x1xf32>
    %345 = vector.shape_cast %344 : vector<1x4x1xf32> to vector<4x1xf32>
    %346 = vector.shape_cast %345 : vector<4x1xf32> to vector<1x4x1xf32>
    %347 = vector.broadcast %346 : vector<1x4x1xf32> to vector<2x4x256xf32>
    %348 = arith.mulf %347, %50 : vector<2x4x256xf32>
    %349 = arith.addf %343, %348 : vector<2x4x256xf32>
    %c15_135 = arith.constant 15 : index
    %c0_136 = arith.constant 0 : index
    %c0_137 = arith.constant 0 : index
    %350 = vector.load %arg9[%c15_135, %c0_136, %c0_137] : memref<18x4x1xf32, #tpu.memory_space<vmem>>, vector<1x4x1xf32>
    %351 = vector.shape_cast %350 : vector<1x4x1xf32> to vector<4x1xf32>
    %352 = vector.shape_cast %351 : vector<4x1xf32> to vector<1x4x1xf32>
    %353 = vector.broadcast %352 : vector<1x4x1xf32> to vector<2x4x256xf32>
    %354 = arith.mulf %353, %86 : vector<2x4x256xf32>
    %355 = arith.addf %349, %354 : vector<2x4x256xf32>
    %c7_138 = arith.constant 7 : index
    %c0_139 = arith.constant 0 : index
    %c0_140 = arith.constant 0 : index
    %356 = vector.load %arg9[%c7_138, %c0_139, %c0_140] : memref<18x4x1xf32, #tpu.memory_space<vmem>>, vector<1x4x1xf32>
    %357 = vector.shape_cast %356 : vector<1x4x1xf32> to vector<4x1xf32>
    %358 = vector.shape_cast %357 : vector<4x1xf32> to vector<1x4x1xf32>
    %359 = vector.broadcast %358 : vector<1x4x1xf32> to vector<2x4x256xf32>
    %360 = arith.mulf %359, %53 : vector<2x4x256xf32>
    %361 = arith.addf %355, %360 : vector<2x4x256xf32>
    %c16_141 = arith.constant 16 : index
    %c0_142 = arith.constant 0 : index
    %c0_143 = arith.constant 0 : index
    %362 = vector.load %arg9[%c16_141, %c0_142, %c0_143] : memref<18x4x1xf32, #tpu.memory_space<vmem>>, vector<1x4x1xf32>
    %363 = vector.shape_cast %362 : vector<1x4x1xf32> to vector<4x1xf32>
    %364 = vector.shape_cast %363 : vector<4x1xf32> to vector<1x4x1xf32>
    %365 = vector.broadcast %364 : vector<1x4x1xf32> to vector<2x4x256xf32>
    %366 = arith.mulf %365, %89 : vector<2x4x256xf32>
    %367 = arith.addf %361, %366 : vector<2x4x256xf32>
    %c8_144 = arith.constant 8 : index
    %c0_145 = arith.constant 0 : index
    %c0_146 = arith.constant 0 : index
    %368 = vector.load %arg9[%c8_144, %c0_145, %c0_146] : memref<18x4x1xf32, #tpu.memory_space<vmem>>, vector<1x4x1xf32>
    %369 = vector.shape_cast %368 : vector<1x4x1xf32> to vector<4x1xf32>
    %370 = vector.shape_cast %369 : vector<4x1xf32> to vector<1x4x1xf32>
    %371 = vector.broadcast %370 : vector<1x4x1xf32> to vector<2x4x256xf32>
    %372 = arith.mulf %371, %56 : vector<2x4x256xf32>
    %373 = arith.addf %367, %372 : vector<2x4x256xf32>
    %c17_147 = arith.constant 17 : index
    %c0_148 = arith.constant 0 : index
    %c0_149 = arith.constant 0 : index
    %374 = vector.load %arg9[%c17_147, %c0_148, %c0_149] : memref<18x4x1xf32, #tpu.memory_space<vmem>>, vector<1x4x1xf32>
    %375 = vector.shape_cast %374 : vector<1x4x1xf32> to vector<4x1xf32>
    %376 = vector.shape_cast %375 : vector<4x1xf32> to vector<1x4x1xf32>
    %377 = vector.broadcast %376 : vector<1x4x1xf32> to vector<2x4x256xf32>
    %378 = arith.mulf %377, %92 : vector<2x4x256xf32>
    %379 = arith.addf %373, %378 : vector<2x4x256xf32>
    %c0_150 = arith.constant 0 : index
    %c0_151 = arith.constant 0 : index
    %380 = vector.load %arg10[%c0_150, %c0_151] : memref<4x1xf32, #tpu.memory_space<vmem>>, vector<4x1xf32>
    %381 = vector.shape_cast %380 : vector<4x1xf32> to vector<1x4x1xf32>
    %382 = vector.broadcast %381 : vector<1x4x1xf32> to vector<2x4x256xf32>
    %383 = arith.addf %379, %382 : vector<2x4x256xf32>
    %cst_152 = arith.constant 0.000000e+00 : f32
    %384 = vector.broadcast %cst_152 : f32 to vector<2x4x256xf32>
    %385 = arith.cmpf oge, %383, %384 : vector<2x4x256xf32>
    %386 = vector.broadcast %272 : f32 to vector<2x4x256xf32>
    %387 = arith.mulf %386, %383 : vector<2x4x256xf32>
    %388 = arith.select %385, %383, %387 : vector<2x4x256xi1>, vector<2x4x256xf32>
    %cst_153 = arith.constant dense<0.000000e+00> : vector<2x4xf32>
    %389 = vector.multi_reduction <add>, %388, %cst_153 [2] : vector<2x4x256xf32> to vector<2x4xf32>
    %390 = vector.shape_cast %389 : vector<2x4xf32> to vector<2x4x1xf32>
    %cst_154 = arith.constant 2.560000e+02 : f32
    %391 = vector.broadcast %cst_154 : f32 to vector<2x4x1xf32>
    %392 = arith.divf %390, %391 : vector<2x4x1xf32>
    %393 = arith.mulf %388, %388 : vector<2x4x256xf32>
    %cst_155 = arith.constant dense<0.000000e+00> : vector<2x4xf32>
    %394 = vector.multi_reduction <add>, %393, %cst_155 [2] : vector<2x4x256xf32> to vector<2x4xf32>
    %395 = vector.shape_cast %394 : vector<2x4xf32> to vector<2x4x1xf32>
    %cst_156 = arith.constant 2.560000e+02 : f32
    %396 = vector.broadcast %cst_156 : f32 to vector<2x4x1xf32>
    %397 = arith.divf %395, %396 : vector<2x4x1xf32>
    %398 = arith.mulf %392, %392 : vector<2x4x1xf32>
    %399 = arith.subf %397, %398 : vector<2x4x1xf32>
    %cst_157 = arith.constant 0.000000e+00 : f32
    %400 = vector.broadcast %cst_157 : f32 to vector<2x4x1xf32>
    %401 = arith.maximumf %399, %400 : vector<2x4x1xf32>
    %402 = vector.broadcast %392 : vector<2x4x1xf32> to vector<2x4x256xf32>
    %403 = arith.subf %388, %402 : vector<2x4x256xf32>
    %cst_158 = arith.constant 9.99999974E-6 : f32
    %404 = vector.broadcast %cst_158 : f32 to vector<2x4x1xf32>
    %405 = arith.addf %401, %404 : vector<2x4x1xf32>
    %406 = math.rsqrt %405 : vector<2x4x1xf32>
    %407 = vector.broadcast %406 : vector<2x4x1xf32> to vector<2x4x256xf32>
    %408 = arith.mulf %403, %407 : vector<2x4x256xf32>
    %409 = arith.mulf %408, %271 : vector<2x4x256xf32>
    %cst_159 = arith.constant dense<0.000000e+00> : vector<2x4xf32>
    %410 = vector.multi_reduction <add>, %409, %cst_159 [2] : vector<2x4x256xf32> to vector<2x4xf32>
    %411 = vector.shape_cast %410 : vector<2x4xf32> to vector<2x4x1xf32>
    %cst_160 = arith.constant 2.560000e+02 : f32
    %412 = vector.broadcast %cst_160 : f32 to vector<2x4x1xf32>
    %413 = arith.divf %411, %412 : vector<2x4x1xf32>
    %414 = arith.mulf %409, %409 : vector<2x4x256xf32>
    %cst_161 = arith.constant dense<0.000000e+00> : vector<2x4xf32>
    %415 = vector.multi_reduction <add>, %414, %cst_161 [2] : vector<2x4x256xf32> to vector<2x4xf32>
    %416 = vector.shape_cast %415 : vector<2x4xf32> to vector<2x4x1xf32>
    %cst_162 = arith.constant 2.560000e+02 : f32
    %417 = vector.broadcast %cst_162 : f32 to vector<2x4x1xf32>
    %418 = arith.divf %416, %417 : vector<2x4x1xf32>
    %419 = arith.mulf %413, %413 : vector<2x4x1xf32>
    %420 = arith.subf %418, %419 : vector<2x4x1xf32>
    %cst_163 = arith.constant 0.000000e+00 : f32
    %421 = vector.broadcast %cst_163 : f32 to vector<2x4x1xf32>
    %422 = arith.maximumf %420, %421 : vector<2x4x1xf32>
    %423 = vector.broadcast %413 : vector<2x4x1xf32> to vector<2x4x256xf32>
    %424 = arith.subf %409, %423 : vector<2x4x256xf32>
    %cst_164 = arith.constant 9.99999974E-6 : f32
    %425 = vector.broadcast %cst_164 : f32 to vector<2x4x1xf32>
    %426 = arith.addf %422, %425 : vector<2x4x1xf32>
    %427 = math.rsqrt %426 : vector<2x4x1xf32>
    %428 = vector.broadcast %427 : vector<2x4x1xf32> to vector<2x4x256xf32>
    %429 = arith.mulf %424, %428 : vector<2x4x256xf32>
    %c0_165 = arith.constant 0 : index
    %c0_166 = arith.constant 0 : index
    %c0_167 = arith.constant 0 : index
    %430 = vector.load %arg11[%c0_165, %c0_166, %c0_167] : memref<2x4x256xf32, #tpu.memory_space<vmem>>, vector<2x4x256xf32>
    tpu.vector_store %arg11[%c0_165, %c0_166, %c0_167], %429 {strides = array<i32>} : memref<2x4x256xf32, #tpu.memory_space<vmem>>, vector<2x4x256xf32>,
    return
  }
  func.func @transform_0(%arg0: i32) -> i32 {
    %c0_i32 = arith.constant 0 : i32
    %c0_i32_0 = arith.constant 0 : i32
    return %c0_i32 : i32
  }
  func.func @transform_1(%arg0: i32) -> (i32, i32, i32, i32) {
    %c0_i32 = arith.constant 0 : i32
    %c0_i32_0 = arith.constant 0 : i32
    %c0_i32_1 = arith.constant 0 : i32
    %c0_i32_2 = arith.constant 0 : i32
    %c0_i32_3 = arith.constant 0 : i32
    return %c0_i32, %c0_i32_0, %c0_i32_1, %c0_i32_2 : i32, i32, i32, i32
  }
  func.func @transform_2(%arg0: i32) -> (i32, i32, i32) {
    %c0_i32 = arith.constant 0 : i32
    %c0_i32_0 = arith.constant 0 : i32
    %c0_i32_1 = arith.constant 0 : i32
    %c0_i32_2 = arith.constant 0 : i32
    return %c0_i32, %c0_i32_0, %c0_i32_1 : i32, i32, i32
  }
  func.func @transform_3(%arg0: i32) -> (i32, i32) {
    %c0_i32 = arith.constant 0 : i32
    %c0_i32_0 = arith.constant 0 : i32
    %c0_i32_1 = arith.constant 0 : i32
    return %c0_i32, %c0_i32_0 : i32, i32
  }
  func.func @transform_4(%arg0: i32) -> (i32, i32) {
    %c0_i32 = arith.constant 0 : i32
    %c0_i32_0 = arith.constant 0 : i32
    %c0_i32_1 = arith.constant 0 : i32
    return %c0_i32, %c0_i32_0 : i32, i32
  }
  func.func @transform_5(%arg0: i32) -> (i32, i32) {
    %c0_i32 = arith.constant 0 : i32
    %c0_i32_0 = arith.constant 0 : i32
    %c0_i32_1 = arith.constant 0 : i32
    return %c0_i32, %c0_i32_0 : i32, i32
  }
  func.func @transform_6(%arg0: i32) -> (i32, i32) {
    %c0_i32 = arith.constant 0 : i32
    %c0_i32_0 = arith.constant 0 : i32
    %c0_i32_1 = arith.constant 0 : i32
    return %c0_i32, %c0_i32_0 : i32, i32
  }
  func.func @transform_7(%arg0: i32) -> (i32, i32) {
    %c0_i32 = arith.constant 0 : i32
    %c0_i32_0 = arith.constant 0 : i32
    %c0_i32_1 = arith.constant 0 : i32
    return %c0_i32, %c0_i32_0 : i32, i32
  }
  func.func @transform_8(%arg0: i32) -> (i32, i32, i32) {
    %c0_i32 = arith.constant 0 : i32
    %c0_i32_0 = arith.constant 0 : i32
    %c0_i32_1 = arith.constant 0 : i32
    %c0_i32_2 = arith.constant 0 : i32
    return %c0_i32, %c0_i32_0, %c0_i32_1 : i32, i32, i32
  }
  func.func @transform_9(%arg0: i32) -> (i32, i32) {
    %c0_i32 = arith.constant 0 : i32
    %c0_i32_0 = arith.constant 0 : i32
    %c0_i32_1 = arith.constant 0 : i32
    return %c0_i32, %c0_i32_0 : i32, i32
  }
  func.func @transform_10(%arg0: i32) -> (i32, i32, i32) {
    %c0_i32 = arith.constant 0 : i32
    %c0_i32_0 = arith.constant 0 : i32
    %c0_i32_1 = arith.constant 0 : i32
    %c0_i32_2 = arith.constant 0 : i32
    return %c0_i32, %c0_i32_0, %c0_i32_1 : i32, i32, i32
  }
}

</mosaic_0001>

<bundles_post_ra>
// kernel: tpu_custom_call.1
= control target key start
LH: loop header
LB: loop body
LE: loop exit
PB: predicated region body
PF: predicated region fallthrough
CT: control target
= control target key end

     0   :  { %15 = vsyncpa [#allocation4], 0  ;;  %s2570_s0 = inlined_call_operand.vmem [shape: f32[4], index: 0, kind: input, shape index: {}]   ;;  %s2571_s1 = inlined_call_operand.vmem [shape: f32[2,2,4,256], index: 1, kind: input, shape index: {}]   ;;  %s2572_s2 = inlined_call_operand.vmem [shape: f32[18,4,1], index: 2, kind: input, shape index: {}]   ;;  %s2573_s3 = inlined_call_operand.vmem [shape: f32[4,1], index: 3, kind: input, shape index: {}]   ;;  %s2574_s4 = inlined_call_operand.vmem [shape: f32[8,4], index: 4, kind: input, shape index: {}]   ;;  %s2575_s5 = inlined_call_operand.vmem [shape: f32[8,1], index: 5, kind: input, shape index: {}]   ;;  %s2576_s6 = inlined_call_operand.vmem [shape: f32[4,8], index: 6, kind: input, shape index: {}]   ;;  %s2577_s7 = inlined_call_operand.vmem [shape: f32[4,1], index: 7, kind: input, shape index: {}]   ;;  %s2578_s8 = inlined_call_operand.vmem [shape: f32[18,4,1], index: 8, kind: input, shape index: {}]   ;;  %s2579_s9 = inlined_call_operand.vmem [shape: f32[4,1], index: 9, kind: input, shape index: {}]   ;;  %s2580_s10 = inlined_call_operand.hbm [shape: f32[2,4,256], index: 10, kind: output, shape index: {}]  }
   0x1   :  { %16 = vsyncpa [#allocation3], 0  ;;  %s23_s15 = sshll.u32 %s2570_s0, 4  ;;  %s24_s15 = int_to_ptr.vmem [resolvable:$true] %s23_s15 }
   0x2   :  { %s1579_s16 = scalar_lea.vmem %s24_s15, 16  ;;  %p1584_p1 = scmp.lt.s32.totalorder %s24_s15, %s24_s15 }
   0x3   :  { %p1580_p0 = scmp.ne.s32.totalorder %s24_s15, %s1579_s16  ;;  %p1585_p2 = scmp.lt.s32.totalorder %s1579_s16, %s1579_s16 }
   0x5   :  { %p1586_p3 = por %p1585_p2, %p1584_p1 }
   0x7   :  { %p1587_p4 = pnand %p1586_p3, %p1580_p0 }
   0x9   :  { %1590 = shalt.err (!%p1587_p4)
}
   0xa   :  { %s1617_s17 = smov [#allocation2]  }
   0xb   :  { %26 = dma.vmem_to_smem %s24_s15, 16, %s1617_s17, [#allocation4]  }
   0xc   :  { %1613 = dma.done.wait [#allocation4], 16  }
   0xd   :  { %1614 = vsyncadd [#allocation4], 4294967280 }
   0xe   :  { %48 = sfence }
   0xf   :  { %v1499_v0 = vld [vmem:[%s2572_s2 + $0x4] sm:$0xf]  ;;  %v402_v1 = vld [vmem:[%s2572_s2] sm:$0xf]  ;;  %v54_v2 = vlaneseq  ;;  %v1618_v3 = vmov 0   ;;  %v1709_v10 = vld [vmem:[%s2571_s1 + $0x8] sm:$0xff] }
  0x10   :  { %1558 = vset.pattern.permute.xlu1 %v1618_v3  ;;  %1557 = vset.pattern.permute.xlu0 %v1618_v3  ;;  %v1698_v4 = vld [vmem:[%s2571_s1] sm:$0xff]  ;;  %v1500_v6 = vld [vmem:[%s2572_s2 + $0x28] sm:$0xf]  ;;  %v1726_v15 = vcombine.high %v1709_v10, %v1709_v10  ;;  %v1735_v17 = vld [vmem:[%s2571_s1 + $0x10] sm:$0xff]  ;;  %s1619_s11 = smov 17   ;;  %s1620_s16 = smov 16  }
  0x11   :  { %431 = vperm.xlu1 %1558, %v1499_v0   ;;  %405 = vperm.xlu0 %1557, %v402_v1   ;;  %v55_v5 = vand.u32 127, %v54_v2  ;;  %v1498_v7 = vld [vmem:[%s2572_s2 + $0x24] sm:$0xf]  ;;  %v1713_v11 = vcombine.high %v1698_v4, %v1698_v4  ;;  %v1756_v21 = vcombine.high %v1735_v17, %v1735_v17  ;;  %v1761_v22 = vld [vmem:[%s2571_s1 + $0x18] sm:$0xff]  ;;  %v1501_v28 = vld [vmem:[%s2572_s2 + $0x8] sm:$0xf] }
  0x12   :  { %2613 = vst [vmem:[#allocation9_spill] sm:$0xff] %v1726_v15  ;;  %v1777_v25 = vcombine.high %v1761_v22, %v1761_v22  ;;  %v1502_v29 = vld [vmem:[%s2572_s2 + $0x2c] sm:$0xf]  ;;  %s1621_s21 = smov 15   ;;  %v1504_v37 = vld [vmem:[%s2572_s2 + $0x30] sm:$0xf] }
  0x13   :  { %v61_v8 = vand.u32 15, %v55_v5  ;;  %v56_v9 = vadd.s32 128, %v55_v5  ;;  %2610 = vst [vmem:[#allocation8_spill] sm:$0xff] %v1713_v11  ;;  %2616 = vst [vmem:[#allocation10_spill] sm:$0xff] %v1756_v21  ;;  %v1503_v31 = vld [vmem:[%s2572_s2 + $0xc] sm:$0xf] }
  0x14   :  { %2617 = vst [vmem:[#allocation11_spill] sm:$0xff] %v1777_v25  ;;  %v1505_v42 = vld [vmem:[%s2572_s2 + $0x10] sm:$0xf]  ;;  %s1622_s25 = smov 1   ;;  %v1506_v43 = vld [vmem:[%s2572_s2 + $0x34] sm:$0xf] }
  0x15   :  { %446 = vperm.xlu1 %1558, %v1500_v6   ;;  %416 = vperm.xlu0 %1557, %v1498_v7   ;;  %vm1715_vm0 = vcmp.le.s32.totalorder %v61_v8, 14  ;;  %v68_v13 = vand.u32 15, %v56_v9  ;;  %vm1805_vm2 = vcmp.ge.s32.totalorder %v61_v8, 1  ;;  %v1507_v44 = vld [vmem:[%s2572_s2 + $0x14] sm:$0xf]  ;;  %s1623_s14 = smov 127  }
  0x16   :  { %v1722_v14 = vsel %vm1715_vm0, %v1698_v4, 0.0  ;;  %v1747_v19 = vsel %vm1715_vm0, %v1709_v10, 0.0  ;;  %v1768_v23 = vsel %vm1715_vm0, %v1735_v17, 0.0  ;;  %v1784_v26 = vsel %vm1715_vm0, %v1761_v22, 0.0  ;;  %v1508_v45 = vld [vmem:[%s2572_s2 + $0x38] sm:$0xf] }
  0x17   :  { %vm1728_vm1 = vcmp.le.s32.totalorder %v68_v13, 14  ;;  %v1817_v32 = vsel %vm1805_vm2, %v1698_v4, 0.0  ;;  %vm1819_vm3 = vcmp.ge.s32.totalorder %v68_v13, 1  ;;  %v1832_v35 = vsel %vm1805_vm2, %v1709_v10, 0.0  ;;  %v1509_v46 = vld [vmem:[%s2572_s2 + $0x18] sm:$0xf] }
  0x18   :  { %v1740_v18 = vsel %vm1728_vm1, %v1713_v11, 0.0  ;;  %v1752_v20 = vsel %vm1728_vm1, %v1726_v15, 0.0  ;;  %v1773_v24 = vsel %vm1728_vm1, %v1756_v21, 0.0  ;;  %v1789_v27 = vsel %vm1728_vm1, %v1777_v25, 0.0  ;;  %v1510_v47 = vld [vmem:[%s2572_s2 + $0x3c] sm:$0xf] }
  0x19   :  { %111 = vrot.lane.b32.xlu0 %v1722_v14, %s1619_s11  ;;  %113 = vrot.lane.b32.xlu1 %v1740_v18, %s1619_s11  ;;  %v1827_v34 = vsel %vm1819_vm3, %v1713_v11, 0.0  ;;  %v1839_v36 = vsel %vm1819_vm3, %v1726_v15, 0.0  ;;  %v1848_v38 = vsel %vm1805_vm2, %v1735_v17, 0.0  ;;  %v1853_v39 = vsel %vm1819_vm3, %v1756_v21, 0.0  ;;  %v1511_v48 = vld [vmem:[%s2572_s2 + $0x1c] sm:$0xf] }
  0x1a   :  { %v1860_v40 = vsel %vm1805_vm2, %v1761_v22, 0.0  ;;  %v1865_v41 = vsel %vm1819_vm3, %v1777_v25, 0.0  ;;  %s1624_s19 = smov 113   ;;  %v1512_v49 = vld [vmem:[%s2572_s2 + $0x40] sm:$0xf]  ;;  %s1625_s23 = smov 112  }
  0x1b   :  { %v1513_v50 = vld [vmem:[%s2572_s2 + $0x20] sm:$0xf]  ;;  %v1514_v55 = vld [vmem:[%s2572_s2 + $0x44] sm:$0xf]  ;;  %s1626_s2 = smov 111   ;;  %vm136_vm4 = vcmask 130048  }
  0x1c   :  { %v667_v2 = vld [vmem:[%s2573_s3] sm:$0xf]  ;;  %vm157_vm5 = vcmask 121856   ;;  %vm119_vm6 = vcmask 138240   ;;  %vm174_vm7 = vcmask 7168   ;;  %vm191_vm8 = vcmask 1039360  }
  0x1d   :  { %115 = vrot.lane.b32.xlu0 %v1747_v19, %s1619_s11  ;;  %117 = vrot.lane.b32.xlu1 %v1752_v20, %s1619_s11  ;;  %vm208_vm9 = vcmask 924672   ;;  %vm225_vm10 = vcmask 916480   ;;  %vm242_vm11 = vcmask 908288   ;;  %s401_s3 = sld [smem:[#allocation2]]  ;;  %vm690_vm14 = vcmask 1043456   ;;  %s1515_s29 = sld [smem:[#allocation2 + $0x1]] }
  0x1e   :  { %vm746_vm1 = vcmask 31744  }
  0x21   :  { %269 = vrot.lane.b32.xlu0 %v1768_v23, %s1619_s11  ;;  %271 = vrot.lane.b32.xlu1 %v1773_v24, %s1619_s11 }
  0x25   :  { %273 = vrot.lane.b32.xlu0 %v1784_v26, %s1619_s11  ;;  %275 = vrot.lane.b32.xlu1 %v1789_v27, %s1619_s11  ;;  %s1628_s11 = smov [#allocation5]  }
  0x26   :  { %s1484_s12 = sshll.u32 %s1628_s11, 4  ;;  %s1485_s12 = int_to_ptr.vmem [resolvable:$true] %s1484_s12 }
  0x27   :  { %s1591_s13 = scalar_lea.vmem %s1485_s12, 256  ;;  %p1596_p6 = scmp.lt.s32.totalorder %s1485_s12, %s1485_s12 }
  0x28   :  { %p1592_p5 = scmp.ne.s32.totalorder %s1485_s12, %s1591_s13  ;;  %p1597_p7 = scmp.lt.s32.totalorder %s1591_s13, %s1591_s13 }
  0x29   :  { %461 = vperm.xlu0 %1557, %v1501_v28   ;;  %128 = vrot.lane.b32.xlu1 %v1698_v4, %s1620_s16 }
  0x2a   :  { %p1598_p8 = por %p1597_p7, %p1596_p6 }
  0x2c   :  { %p1599_p9 = pnand %p1598_p8, %p1592_p5 }
  0x2d   :  { %130 = vrot.lane.b32.xlu0 %v1713_v11, %s1620_s16  ;;  %132 = vrot.lane.b32.xlu1 %v1709_v10, %s1620_s16 }
  0x31   :  { %134 = vrot.lane.b32.xlu0 %v1726_v15, %s1620_s16  ;;  %476 = vperm.xlu1 %1558, %v1502_v29  }
  0x35   :  { %285 = vrot.lane.b32.xlu0 %v1735_v17, %s1620_s16  ;;  %287 = vrot.lane.b32.xlu1 %v1756_v21, %s1620_s16 }
  0x39   :  { %289 = vrot.lane.b32.xlu0 %v1761_v22, %s1620_s16  ;;  %291 = vrot.lane.b32.xlu1 %v1777_v25, %s1620_s16 }
  0x3d   :  { %491 = vperm.xlu0 %1557, %v1503_v31   ;;  %149 = vrot.lane.b32.xlu1 %v1817_v32, %s1621_s21 }
  0x41   :  { %151 = vrot.lane.b32.xlu0 %v1827_v34, %s1621_s21  ;;  %153 = vrot.lane.b32.xlu1 %v1832_v35, %s1621_s21 }
  0x45   :  { %155 = vrot.lane.b32.xlu0 %v1839_v36, %s1621_s21  ;;  %506 = vperm.xlu1 %1558, %v1504_v37  }
  0x49   :  { %305 = vrot.lane.b32.xlu0 %v1848_v38, %s1621_s21  ;;  %307 = vrot.lane.b32.xlu1 %v1853_v39, %s1621_s21 }
  0x4d   :  { %309 = vrot.lane.b32.xlu0 %v1860_v40, %s1621_s21  ;;  %311 = vrot.lane.b32.xlu1 %v1865_v41, %s1621_s21 }
  0x51   :  { %521 = vperm.xlu0 %1557, %v1505_v42   ;;  %166 = vrot.lane.b32.xlu1 %v1722_v14, %s1622_s25 }
  0x55   :  { %168 = vrot.lane.b32.xlu0 %v1740_v18, %s1622_s25  ;;  %170 = vrot.lane.b32.xlu1 %v1747_v19, %s1622_s25 }
  0x59   :  { %172 = vrot.lane.b32.xlu0 %v1752_v20, %s1622_s25  ;;  %536 = vperm.xlu1 %1558, %v1506_v43  }
  0x5d   :  { %321 = vrot.lane.b32.xlu0 %v1768_v23, %s1622_s25  ;;  %323 = vrot.lane.b32.xlu1 %v1773_v24, %s1622_s25 }
  0x61   :  { %325 = vrot.lane.b32.xlu0 %v1784_v26, %s1622_s25  ;;  %327 = vrot.lane.b32.xlu1 %v1789_v27, %s1622_s25 }
  0x65   :  { %551 = vperm.xlu0 %1557, %v1507_v44   ;;  %566 = vperm.xlu1 %1558, %v1508_v45  }
  0x69   :  { %581 = vperm.xlu0 %1557, %v1509_v46   ;;  %183 = vrot.lane.b32.xlu1 %v1817_v32, %s1623_s14 }
  0x6d   :  { %185 = vrot.lane.b32.xlu0 %v1827_v34, %s1623_s14  ;;  %187 = vrot.lane.b32.xlu1 %v1832_v35, %s1623_s14 }
  0x71   :  { %189 = vrot.lane.b32.xlu0 %v1839_v36, %s1623_s14  ;;  %596 = vperm.xlu1 %1558, %v1510_v47  }
  0x75   :  { %337 = vrot.lane.b32.xlu0 %v1848_v38, %s1623_s14  ;;  %339 = vrot.lane.b32.xlu1 %v1853_v39, %s1623_s14 }
  0x79   :  { %341 = vrot.lane.b32.xlu0 %v1860_v40, %s1623_s14  ;;  %343 = vrot.lane.b32.xlu1 %v1865_v41, %s1623_s14 }
  0x7d   :  { %611 = vperm.xlu0 %1557, %v1511_v48   ;;  %200 = vrot.lane.b32.xlu1 %v1722_v14, %s1624_s19 }
  0x81   :  { %202 = vrot.lane.b32.xlu0 %v1740_v18, %s1624_s19  ;;  %204 = vrot.lane.b32.xlu1 %v1747_v19, %s1624_s19 }
  0x85   :  { %206 = vrot.lane.b32.xlu0 %v1752_v20, %s1624_s19  ;;  %626 = vperm.xlu1 %1558, %v1512_v49  }
  0x89   :  { %353 = vrot.lane.b32.xlu0 %v1768_v23, %s1624_s19  ;;  %355 = vrot.lane.b32.xlu1 %v1773_v24, %s1624_s19 }
  0x8d   :  { %357 = vrot.lane.b32.xlu0 %v1784_v26, %s1624_s19  ;;  %359 = vrot.lane.b32.xlu1 %v1789_v27, %s1624_s19 }
  0x90   :  { %v1920_v51 = vpop.permute.xlu1 %431  ;;  %v1922_v52 = vpop.permute.xlu0 %405 }
  0x91   :  { %641 = vperm.xlu0 %1557, %v1513_v50   ;;  %217 = vrot.lane.b32.xlu1 %v1698_v4, %s1625_s23 }
  0x94   :  { %v1925_v53 = vpop.permute.xlu1 %446  ;;  %v1927_v54 = vpop.permute.xlu0 %416 }
  0x95   :  { %219 = vrot.lane.b32.xlu0 %v1713_v11, %s1625_s23  ;;  %221 = vrot.lane.b32.xlu1 %v1709_v10, %s1625_s23 }
  0x98   :  { %v112_v56 = vpop.permute.xlu0 %111  ;;  %v114_v57 = vpop.permute.xlu1 %113 }
  0x99   :  { %223 = vrot.lane.b32.xlu0 %v1726_v15, %s1625_s23  ;;  %656 = vperm.xlu1 %1558, %v1514_v55   ;;  %v1967_v30 = vsel %vm119_vm6, 0.0, %v112_v56 }
  0x9c   :  { %v116_v58 = vpop.permute.xlu0 %115  ;;  %v118_v59 = vpop.permute.xlu1 %117 }
  0x9d   :  { %369 = vrot.lane.b32.xlu0 %v1735_v17, %s1625_s23  ;;  %371 = vrot.lane.b32.xlu1 %v1756_v21, %s1625_s23  ;;  %v1982_v37 = vsel %vm119_vm6, 0.0, %v116_v58 }
  0x9e   :  { %v410_v50 = vmul.f32 %v1922_v52, %v1982_v37 }
  0xa0   :  { %v270_v60 = vpop.permute.xlu0 %269  ;;  %v272_v61 = vpop.permute.xlu1 %271 }
  0xa1   :  { %373 = vrot.lane.b32.xlu0 %v1761_v22, %s1625_s23  ;;  %375 = vrot.lane.b32.xlu1 %v1777_v25, %s1625_s23  ;;  %v1974_v33 = vsel %vm119_vm6, %v270_v60, %v272_v61 }
  0xa2   :  { %v420_v46 = vmul.f32 %v1927_v54, %v1974_v33 }
  0xa4   :  { %v274_v62 = vpop.permute.xlu0 %273  ;;  %v276_v63 = vpop.permute.xlu1 %275 }
  0xa5   :  { %234 = vrot.lane.b32.xlu0 %v1817_v32, %s1626_s2  ;;  %236 = vrot.lane.b32.xlu1 %v1827_v34, %s1626_s2  ;;  %v1972_v32 = vsel %vm119_vm6, 0.0, %v270_v60  ;;  %v1976_v34 = vsel %vm119_vm6, 0.0, %v274_v62 }
  0xa6   :  { %v419_v45 = vmul.f32 %v1927_v54, %v1972_v32  ;;  %v421_v47 = vmul.f32 %v1927_v54, %v1976_v34 }
  0xa8   :  { %v1941_v0 = vpop.permute.xlu0 %461  ;;  %v129_v1 = vpop.permute.xlu1 %128 }
  0xa9   :  { %238 = vrot.lane.b32.xlu0 %v1832_v35, %s1626_s2  ;;  %240 = vrot.lane.b32.xlu1 %v1839_v36, %s1626_s2  ;;  %v408_v35 = vmul.f32 %v1922_v52, %v1967_v30  ;;  %v1980_v36 = vsel %vm119_vm6, %v112_v56, %v114_v57  ;;  %v1989_v42 = vsel %vm136_vm4, 0.0, %v129_v1 }
  0xaa   :  { %v409_v49 = vmul.f32 %v1922_v52, %v1980_v36  ;;  %v434_v57 = vmul.f32 %v1920_v51, %v1989_v42 }
  0xac   :  { %v131_v3 = vpop.permute.xlu0 %130  ;;  %v133_v5 = vpop.permute.xlu1 %132 }
  0xad   :  { %670 = vperm.xlu0 %1557, %v667_v2   ;;  %385 = vrot.lane.b32.xlu1 %v1848_v38, %s1626_s2  ;;  %v1984_v38 = vsel %vm119_vm6, %v274_v62, %v276_v63  ;;  %v1992_v43 = vsel %vm136_vm4, %v129_v1, %v131_v3  ;;  %v2004_v48 = vsel %vm136_vm4, 0.0, %v133_v5  ;;  %v423_v2 = vadd.f32 %v419_v45, %v408_v35 }
  0xae   :  { %v422_v55 = vmul.f32 %v1927_v54, %v1984_v38  ;;  %v436_v63 = vmul.f32 %v1920_v51, %v2004_v48  ;;  %v424_v3 = vadd.f32 %v420_v46, %v409_v49 }
  0xb0   :  { %v135_v6 = vpop.permute.xlu0 %134  ;;  %v1949_v7 = vpop.permute.xlu1 %476 }
  0xb1   :  { %387 = vrot.lane.b32.xlu0 %v1853_v39, %s1626_s2  ;;  %389 = vrot.lane.b32.xlu1 %v1860_v40, %s1626_s2  ;;  %v2013_v56 = vsel %vm136_vm4, %v133_v5, %v135_v6  ;;  %v425_v5 = vadd.f32 %v421_v47, %v410_v50 }
  0xb2   :  { %v437_v6 = vmul.f32 %v1920_v51, %v2013_v56 }
  0xb4   :  { %v286_v8 = vpop.permute.xlu0 %285  ;;  %v288_v9 = vpop.permute.xlu1 %287 }
  0xb5   :  { %391 = vrot.lane.b32.xlu0 %v1865_v41, %s1626_s2  ;;  %v1986_v41 = vsel %vm119_vm6, %v116_v58, %v118_v59  ;;  %v435_v58 = vmul.f32 %v1920_v51, %v1992_v43  ;;  %v2020_v59 = vsel %vm136_vm4, 0.0, %v286_v8  ;;  %v2023_v60 = vsel %vm136_vm4, %v286_v8, %v288_v9 }
  0xb6   :  { %v411_v54 = vmul.f32 %v1922_v52, %v1986_v41  ;;  %v449_v9 = vmul.f32 %v1925_v53, %v2020_v59  ;;  %v450_v52 = vmul.f32 %v1925_v53, %v2023_v60 }
  0xb8   :  { %v290_v12 = vpop.permute.xlu0 %289  ;;  %v292_v13 = vpop.permute.xlu1 %291  ;;  %v426_v8 = vadd.f32 %v422_v55, %v411_v54 }
  0xb9   :  { %v1955_v14 = vsel %vm136_vm4, %v290_v12, %v292_v13  ;;  %v2032_v1 = vsel %vm136_vm4, 0.0, %v290_v12  ;;  %v439_v12 = vadd.f32 %v435_v58, %v424_v3 }
  0xba   :  { %v452_v45 = vmul.f32 %v1925_v53, %v1955_v14  ;;  %v441_v47 = vadd.f32 %v437_v6, %v426_v8 }
  0xbc   :  { %v1957_v16 = vpop.permute.xlu0 %491  ;;  %v150_v18 = vpop.permute.xlu1 %149 }
  0xbd   :  { %v2041_v13 = vsel %vm157_vm5, 0.0, %v150_v18 }
  0xbe   :  { %v464_v49 = vmul.f32 %v1941_v0, %v2041_v13 }
  0xc0   :  { %v152_v19 = vpop.permute.xlu0 %151  ;;  %v154_v20 = vpop.permute.xlu1 %153 }
  0xc1   :  { %v1960_v23 = vsel %vm157_vm5, %v150_v18, %v152_v19  ;;  %v438_v19 = vadd.f32 %v434_v57, %v423_v2  ;;  %v454_v57 = vadd.f32 %v450_v52, %v439_v12 }
  0xc3   :  { %v453_v55 = vadd.f32 %v449_v9, %v438_v19 }
  0xc4   :  { %v156_v24 = vpop.permute.xlu0 %155  ;;  %v1962_v26 = vpop.permute.xlu1 %506 }
  0xc5   :  { %v1965_v27 = vsel %vm157_vm5, %v154_v20, %v156_v24  ;;  %v451_v24 = vmul.f32 %v1925_v53, %v2032_v1  ;;  %v468_v9 = vadd.f32 %v464_v49, %v453_v55 }
  0xc6   :  { %v467_v54 = vmul.f32 %v1941_v0, %v1965_v27 }
  0xc8   :  { %v306_v28 = vpop.permute.xlu0 %305  ;;  %v308_v29 = vpop.permute.xlu1 %307 }
  0xc9   :  { %v1970_v31 = vsel %vm157_vm5, %v306_v28, %v308_v29  ;;  %v2046_v29 = vsel %vm157_vm5, 0.0, %v154_v20  ;;  %v2051_v46 = vsel %vm157_vm5, 0.0, %v306_v28  ;;  %v465_v20 = vmul.f32 %v1941_v0, %v1960_v23 }
  0xca   :  { %v466_v53 = vmul.f32 %v1941_v0, %v2046_v29  ;;  %v480_v2 = vmul.f32 %v1949_v7, %v1970_v31 }
  0xcb   :  { %v469_v0 = vadd.f32 %v465_v20, %v454_v57 }
  0xcc   :  { %v310_v39 = vpop.permute.xlu0 %309  ;;  %v312_v40 = vpop.permute.xlu1 %311 }
  0xcd   :  { %v1995_v44 = vsel %vm157_vm5, %v310_v39, %v312_v40  ;;  %v440_v40 = vadd.f32 %v436_v63, %v425_v5  ;;  %v2061_v50 = vsel %vm157_vm5, 0.0, %v310_v39  ;;  %v479_v63 = vmul.f32 %v1949_v7, %v2051_v46 }
  0xce   :  { %v456_v5 = vadd.f32 %v452_v45, %v441_v47  ;;  %v481_v6 = vmul.f32 %v1949_v7, %v2061_v50  ;;  %v484_v45 = vadd.f32 %v480_v2, %v469_v0 }
  0xcf   :  { %v455_v58 = vadd.f32 %v451_v24, %v440_v40  ;;  %v482_v24 = vmul.f32 %v1949_v7, %v1995_v44  ;;  %v483_v40 = vadd.f32 %v479_v63, %v468_v9 }
  0xd0   :  { %v2025_v61 = vpop.permute.xlu0 %521  ;;  %v167_v62 = vpop.permute.xlu1 %166 }
  0xd1   :  { %v2066_v28 = vsel %vm174_vm7, 0.0, %v167_v62  ;;  %v470_v12 = vadd.f32 %v466_v53, %v455_v58  ;;  %v524_v2 = vmul.f32 %v2025_v61, %v1698_v4 }
  0xd2   :  { %2623 = vst [vmem:[#allocation13_spill] sm:$0xff] %v2066_v28  ;;  %v494_v52 = vmul.f32 %v1957_v16, %v2066_v28 }
  0xd3   :  { %v485_v49 = vadd.f32 %v481_v6, %v470_v12 }
  0xd4   :  { %v169_v35 = vpop.permute.xlu0 %168  ;;  %v171_v51 = vpop.permute.xlu1 %170  ;;  %v498_v53 = vadd.f32 %v494_v52, %v483_v40 }
  0xd5   :  { %v2054_v18 = vsel %vm174_vm7, %v167_v62, %v169_v35  ;;  %v2077_v8 = vsel %vm174_vm7, 0.0, %v171_v51  ;;  %v471_v35 = vadd.f32 %v467_v54, %v456_v5 }
  0xd6   :  { %2622 = vst [vmem:[#allocation12_spill] sm:$0xff] %v2054_v18  ;;  %2624 = vst [vmem:[#allocation14_spill] sm:$0xff] %v2077_v8  ;;  %v495_v19 = vmul.f32 %v1957_v16, %v2054_v18  ;;  %v496_v47 = vmul.f32 %v1957_v16, %v2077_v8 }
  0xd7   :  { %v486_v63 = vadd.f32 %v482_v24, %v471_v35 }
  0xd8   :  { %v173_v39 = vpop.permute.xlu0 %172  ;;  %v537_v3 = vpop.permute.xlu1 %536  ;;  %v499_v7 = vadd.f32 %v495_v19, %v484_v45  ;;  %v500_v5 = vadd.f32 %v496_v47, %v485_v49 }
  0xd9   :  { %v2080_v62 = vsel %vm174_vm7, %v171_v51, %v173_v39  ;;  %v539_v6 = vmul.f32 %v1735_v17, %v537_v3  ;;  %v540_v40 = vmul.f32 %v537_v3, %v1756_v21 }
  0xda   :  { %2625 = vst [vmem:[#allocation15_spill] sm:$0xff] %v2080_v62  ;;  %v497_v20 = vmul.f32 %v1957_v16, %v2080_v62  ;;  %v525_v16 = vmul.f32 %v2025_v61, %v1713_v11 }
  0xdc   :  { %v322_v51 = vpop.permute.xlu0 %321  ;;  %v324_v39 = vpop.permute.xlu1 %323  ;;  %v501_v12 = vadd.f32 %v497_v20, %v486_v63  ;;  %v541_v63 = vmul.f32 %v1761_v22, %v537_v3 }
  0xdd   :  { %v2093_v55 = vsel %vm174_vm7, 0.0, %v322_v51  ;;  %v2096_v57 = vsel %vm174_vm7, %v322_v51, %v324_v39  ;;  %v526_v51 = vmul.f32 %v2025_v61, %v1709_v10  ;;  %v527_v39 = vmul.f32 %v2025_v61, %v1726_v15 }
  0xde   :  { %v509_v58 = vmul.f32 %v1962_v26, %v2093_v55  ;;  %v510_v54 = vmul.f32 %v1962_v26, %v2096_v57 }
  0xe0   :  { %v513_v9 = vadd.f32 %v509_v58, %v498_v53  ;;  %v514_v0 = vadd.f32 %v510_v54, %v499_v7  ;;  %v326_v52 = vpop.permute.xlu0 %325  ;;  %v328_v19 = vpop.permute.xlu1 %327 }
  0xe1   :  { %v2109_v45 = vsel %vm174_vm7, 0.0, %v326_v52  ;;  %v2112_v24 = vsel %vm174_vm7, %v326_v52, %v328_v19 }
  0xe2   :  { %2626 = vst [vmem:[#allocation16_spill] sm:$0xff] %v2109_v45  ;;  %2627 = vst [vmem:[#allocation17_spill] sm:$0xff] %v2112_v24  ;;  %v528_v4 = vadd.f32 %v524_v2, %v513_v9  ;;  %v529_v35 = vadd.f32 %v525_v16, %v514_v0  ;;  %v511_v47 = vmul.f32 %v1962_v26, %v2109_v45 }
  0xe3   :  { %v512_v17 = vmul.f32 %v1962_v26, %v2112_v24  ;;  %v542_v2 = vmul.f32 %v537_v3, %v1777_v25 }
  0xe4   :  { %v515_v49 = vadd.f32 %v511_v47, %v500_v5  ;;  %v552_v53 = vpop.permute.xlu0 %551  ;;  %v2122_v7 = vpop.permute.xlu1 %566  ;;  %v2124_v58 = vadd.f32 %v539_v6, %v528_v4  ;;  %v2126_v54 = vadd.f32 %v540_v40, %v529_v35 }
  0xe5   :  { %v516_v20 = vadd.f32 %v512_v17, %v501_v12 }
  0xe6   :  { %v530_v26 = vadd.f32 %v526_v51, %v515_v49 }
  0xe7   :  { %v531_v16 = vadd.f32 %v527_v39, %v516_v20 }
  0xe8   :  { %v2130_v9 = vpop.permute.xlu0 %581  ;;  %v184_v10 = vpop.permute.xlu1 %183  ;;  %v545_v0 = vadd.f32 %v541_v63, %v530_v26 }
  0xe9   :  { %v546_v61 = vadd.f32 %v542_v2, %v531_v16 }
  0xec   :  { %v186_v5 = vpop.permute.xlu0 %185  ;;  %v188_v52 = vpop.permute.xlu1 %187 }
  0xf0   :  { %v190_v19 = vpop.permute.xlu0 %189  ;;  %v2132_v12 = vpop.permute.xlu1 %596 }
  0xf1   :  { %v2135_v6 = vsel %vm191_vm8, %v188_v52, %v190_v19  ;;  %v2138_v22 = vsel %vm191_vm8, %v190_v19, 0.0 }
  0xf2   :  { %2628 = vst [vmem:[#allocation18_spill] sm:$0xff] %v2135_v6  ;;  %2629 = vst [vmem:[#allocation19_spill] sm:$0xff] %v2138_v22  ;;  %v556_v3 = vmul.f32 %v552_v53, %v2135_v6  ;;  %v557_v40 = vmul.f32 %v552_v53, %v2138_v22 }
  0xf4   :  { %v560_v4 = vadd.f32 %v556_v3, %v545_v0  ;;  %v561_v35 = vadd.f32 %v557_v40, %v546_v61  ;;  %v338_v47 = vpop.permute.xlu0 %337  ;;  %v340_v17 = vpop.permute.xlu1 %339 }
  0xf5   :  { %v2183_v24 = vsel %vm191_vm8, %v338_v47, %v340_v17  ;;  %v2186_v45 = vsel %vm191_vm8, %v340_v17, 0.0 }
  0xf6   :  { %2636 = vst [vmem:[#allocation26_spill] sm:$0xff] %v2183_v24  ;;  %2637 = vst [vmem:[#allocation27_spill] sm:$0xff] %v2186_v45  ;;  %v569_v18 = vmul.f32 %v2122_v7, %v2183_v24 }
  0xf8   :  { %v342_v51 = vpop.permute.xlu0 %341  ;;  %v344_v39 = vpop.permute.xlu1 %343 }
  0xf9   :  { %v2143_v49 = vsel %vm191_vm8, %v342_v51, %v344_v39  ;;  %v2146_v20 = vsel %vm191_vm8, %v344_v39, 0.0 }
  0xfa   :  { %2630 = vst [vmem:[#allocation20_spill] sm:$0xff] %v2143_v49  ;;  %2631 = vst [vmem:[#allocation21_spill] sm:$0xff] %v2146_v20  ;;  %v571_v63 = vmul.f32 %v2122_v7, %v2143_v49  ;;  %v572_v2 = vmul.f32 %v2122_v7, %v2146_v20 }
  0xfc   :  { %v575_v26 = vadd.f32 %v571_v63, %v560_v4  ;;  %v576_v16 = vadd.f32 %v572_v2, %v561_v35  ;;  %v2152_v0 = vpop.permute.xlu0 %611  ;;  %v201_v61 = vpop.permute.xlu1 %200 }
 0x100   :  { %v203_v52 = vpop.permute.xlu0 %202  ;;  %v205_v19 = vpop.permute.xlu1 %204 }
 0x101   :  { %v2189_v62 = vsel %vm208_vm9, %v201_v61, %v203_v52 }
 0x102   :  { %v584_v17 = vmul.f32 %v2130_v9, %v2189_v62 }
 0x104   :  { %v207_v3 = vpop.permute.xlu0 %206  ;;  %v2154_v40 = vpop.permute.xlu1 %626 }
 0x105   :  { %v2157_v51 = vsel %vm208_vm9, %v205_v19, %v207_v3  ;;  %v2160_v39 = vsel %vm208_vm9, %v207_v3, 0.0 }
 0x106   :  { %2632 = vst [vmem:[#allocation22_spill] sm:$0xff] %v2157_v51  ;;  %2633 = vst [vmem:[#allocation23_spill] sm:$0xff] %v2160_v39  ;;  %v586_v20 = vmul.f32 %v2130_v9, %v2157_v51  ;;  %v587_v4 = vmul.f32 %v2130_v9, %v2160_v39  ;;  %v2175_v51 = vsel %vm191_vm8, %v184_v10, %v186_v5  ;;  %v2192_v10 = vsel %vm208_vm9, %v203_v52, 0.0 }
 0x107   :  { %2634 = vst [vmem:[#allocation24_spill] sm:$0xff] %v2175_v51  ;;  %v585_v61 = vmul.f32 %v2130_v9, %v2192_v10 }
 0x108   :  { %v2166_v35 = vadd.f32 %v586_v20, %v575_v26  ;;  %v2168_v63 = vadd.f32 %v587_v4, %v576_v16  ;;  %v354_v2 = vpop.permute.xlu0 %353  ;;  %v356_v49 = vpop.permute.xlu1 %355  ;;  %v2178_v20 = vsel %vm191_vm8, %v186_v5, 0.0  ;;  %v554_v4 = vmul.f32 %v552_v53, %v2175_v51 }
 0x109   :  { %2635 = vst [vmem:[#allocation25_spill] sm:$0xff] %v2178_v20  ;;  %v555_v39 = vmul.f32 %v552_v53, %v2178_v20  ;;  %v570_v53 = vmul.f32 %v2122_v7, %v2186_v45  ;;  %v2205_v52 = vsel %vm208_vm9, %v354_v2, %v356_v49  ;;  %v2208_v51 = vsel %vm208_vm9, %v356_v49, 0.0 }
 0x10a   :  { %v558_v47 = vadd.f32 %v554_v4, %v2124_v58  ;;  %v600_v9 = vmul.f32 %v2132_v12, %v2208_v51  ;;  %vm925_vm8 = vcmask 64512  }
 0x10b   :  { %v559_v20 = vadd.f32 %v555_v39, %v2126_v54  ;;  %v599_v39 = vmul.f32 %v2132_v12, %v2205_v52 }
 0x10c   :  { %v358_v22 = vpop.permute.xlu0 %357  ;;  %v360_v6 = vpop.permute.xlu1 %359  ;;  %v573_v7 = vadd.f32 %v569_v18, %v558_v47 }
 0x10d   :  { %v574_v45 = vadd.f32 %v570_v53, %v559_v20  ;;  %v2211_v58 = vsel %vm208_vm9, %v358_v22, %v360_v6  ;;  %v2214_v54 = vsel %vm208_vm9, %v360_v6, 0.0 }
 0x10e   :  { %2638 = vst [vmem:[#allocation28_spill] sm:$0xff] %v2214_v54  ;;  %v588_v18 = vadd.f32 %v584_v17, %v573_v7  ;;  %v601_v22 = vmul.f32 %v2132_v12, %v2211_v58  ;;  %v602_v6 = vmul.f32 %v2132_v12, %v2214_v54 }
 0x10f   :  { %v589_v20 = vadd.f32 %v585_v61, %v574_v45 }
 0x110   :  { %v2170_v25 = vpop.permute.xlu0 %641  ;;  %v218_v19 = vpop.permute.xlu1 %217  ;;  %v603_v12 = vadd.f32 %v599_v39, %v588_v18 }
 0x114   :  { %v220_v15 = vpop.permute.xlu0 %219  ;;  %v222_v3 = vpop.permute.xlu1 %221 }
 0x115   :  { %v2221_v2 = vsel %vm225_vm10, %v218_v19, %v220_v15  ;;  %v2224_v49 = vsel %vm225_vm10, %v220_v15, 0.0 }
 0x116   :  { %2639 = vst [vmem:[#allocation29_spill] sm:$0xff] %v2221_v2  ;;  %v614_v15 = vmul.f32 %v2152_v0, %v2221_v2  ;;  %v615_v45 = vmul.f32 %v2152_v0, %v2224_v49 }
 0x118   :  { %v224_v21 = vpop.permute.xlu0 %223  ;;  %v2172_v11 = vpop.permute.xlu1 %656 }
 0x119   :  { %v2231_v4 = vsel %vm225_vm10, %v222_v3, %v224_v21  ;;  %v2234_v53 = vsel %vm225_vm10, %v224_v21, 0.0  ;;  %v604_v3 = vadd.f32 %v600_v9, %v589_v20  ;;  %v618_v20 = vadd.f32 %v614_v15, %v603_v12 }
 0x11a   :  { %2640 = vst [vmem:[#allocation30_spill] sm:$0xff] %v2231_v4  ;;  %2641 = vst [vmem:[#allocation31_spill] sm:$0xff] %v2234_v53  ;;  %v616_v21 = vmul.f32 %v2152_v0, %v2231_v4  ;;  %v617_v7 = vmul.f32 %v2152_v0, %v2234_v53 }
 0x11b   :  { %v619_v53 = vadd.f32 %v615_v45, %v604_v3 }
 0x11c   :  { %v370_v26 = vpop.permute.xlu0 %369  ;;  %v372_v16 = vpop.permute.xlu1 %371 }
 0x11d   :  { %v2241_v17 = vsel %vm225_vm10, %v370_v26, %v372_v16  ;;  %v2244_v61 = vsel %vm225_vm10, %v372_v16, 0.0 }
 0x11e   :  { %2642 = vst [vmem:[#allocation32_spill] sm:$0xff] %v2241_v17  ;;  %2643 = vst [vmem:[#allocation33_spill] sm:$0xff] %v2244_v61  ;;  %v629_v26 = vmul.f32 %v2154_v40, %v2241_v17  ;;  %v630_v16 = vmul.f32 %v2154_v40, %v2244_v61 }
 0x120   :  { %v374_v5 = vpop.permute.xlu0 %373  ;;  %v376_v8 = vpop.permute.xlu1 %375  ;;  %v634_v15 = vadd.f32 %v630_v16, %v619_v53 }
 0x121   :  { %v2261_v39 = vsel %vm225_vm10, %v374_v5, %v376_v8  ;;  %v2264_v9 = vsel %vm225_vm10, %v376_v8, 0.0 }
 0x122   :  { %v631_v4 = vmul.f32 %v2154_v40, %v2261_v39 }
 0x124   :  { %v235_v24 = vpop.permute.xlu0 %234  ;;  %v237_v28 = vpop.permute.xlu1 %236 }
 0x125   :  { %v2251_v54 = vsel %vm242_vm11, %v235_v24, %v237_v28  ;;  %v2254_v2 = vsel %vm242_vm11, %v237_v28, 0.0  ;;  %v605_v24 = vadd.f32 %v601_v22, %v2166_v35  ;;  %v606_v28 = vadd.f32 %v602_v6, %v2168_v63 }
 0x126   :  { %2644 = vst [vmem:[#allocation34_spill] sm:$0xff] %v2251_v54  ;;  %2645 = vst [vmem:[#allocation35_spill] sm:$0xff] %v2254_v2  ;;  %v644_v17 = vmul.f32 %v2170_v25, %v2251_v54  ;;  %v645_v61 = vmul.f32 %v2170_v25, %v2254_v2  ;;  %v632_v35 = vmul.f32 %v2154_v40, %v2264_v9 }
 0x127   :  { %v620_v63 = vadd.f32 %v616_v21, %v605_v24  ;;  %v621_v22 = vadd.f32 %v617_v7, %v606_v28  ;;  %v633_v6 = vadd.f32 %v629_v26, %v618_v20  ;;  %v681_v28 = vstv %s401_s3 }
 0x128   :  { %v239_v19 = vpop.permute.xlu0 %238  ;;  %v241_v47 = vpop.permute.xlu1 %240  ;;  %v649_v54 = vadd.f32 %v645_v61, %v634_v15 }
 0x129   :  { %v2273_v5 = vsel %vm242_vm11, %v239_v19, %v241_v47  ;;  %v2276_v8 = vsel %vm242_vm11, %v241_v47, 0.0  ;;  %v648_v2 = vadd.f32 %v644_v17, %v633_v6  ;;  %v635_v7 = vadd.f32 %v631_v4, %v620_v63 }
 0x12a   :  { %2646 = vst [vmem:[#allocation36_spill] sm:$0xff] %v2276_v8  ;;  %v646_v12 = vmul.f32 %v2170_v25, %v2273_v5  ;;  %v647_v19 = vmul.f32 %v2170_v25, %v2276_v8  ;;  %v636_v26 = vadd.f32 %v632_v35, %v621_v22 }
 0x12c   :  { %v671_v18 = vpop.permute.xlu0 %670  ;;  %v386_v0 = vpop.permute.xlu1 %385  ;;  %v650_v20 = vadd.f32 %v646_v12, %v635_v7  ;;  %v651_v8 = vadd.f32 %v647_v19, %v636_v26 }
 0x130   :  { %v388_v45 = vpop.permute.xlu0 %387  ;;  %v390_v21 = vpop.permute.xlu1 %389 }
 0x131   :  { %v2287_v47 = vsel %vm242_vm11, %v388_v45, 0.0  ;;  %v2290_v3 = vsel %vm242_vm11, %v386_v0, %v388_v45 }
 0x132   :  { %v660_v40 = vmul.f32 %v2172_v11, %v2287_v47  ;;  %v659_v53 = vmul.f32 %v2172_v11, %v2290_v3 }
 0x134   :  { %v664_v16 = vadd.f32 %v660_v40, %v649_v54  ;;  %v663_v24 = vadd.f32 %v659_v53, %v648_v2  ;;  %v392_v25 = vpop.permute.xlu0 %391 }
 0x135   :  { %v2297_v0 = vsel %vm242_vm11, %v392_v25, 0.0  ;;  %v2300_v17 = vsel %vm242_vm11, %v390_v21, %v392_v25 }
 0x136   :  { %v674_v61 = vadd.f32 %v671_v18, %v664_v16  ;;  %v673_v6 = vadd.f32 %v671_v18, %v663_v24  ;;  %v662_v15 = vmul.f32 %v2172_v11, %v2297_v0  ;;  %v661_v4 = vmul.f32 %v2172_v11, %v2300_v17 }
 0x138   :  { %v666_v54 = vadd.f32 %v662_v15, %v651_v8  ;;  %v665_v2 = vadd.f32 %v661_v4, %v650_v20  ;;  %vm677_vm12 = vcmp.ge.f32.partialorder %v673_v6, 0.0  ;;  %vm678_vm13 = vcmp.ge.f32.partialorder %v674_v61, 0.0 }
 0x139   :  { %v682_v35 = vmul.f32 %v681_v28, %v673_v6  ;;  %v683_v63 = vmul.f32 %v681_v28, %v674_v61 }
 0x13a   :  { %v676_v22 = vadd.f32 %v671_v18, %v666_v54  ;;  %v675_v45 = vadd.f32 %v671_v18, %v665_v2 }
 0x13b   :  { %v2306_v12 = vsel %vm677_vm12, %v673_v6, %v682_v35  ;;  %v2308_v19 = vsel %vm678_vm13, %v674_v61, %v683_v63  ;;  %v1085_v63 = vld [vmem:[%s2578_s8] sm:$0xf] }
 0x13c   :  { %v691_v40 = vsel %vm690_vm14, %v2306_v12, 0.0  ;;  %v692_v53 = vsel %vm690_vm14, %v2308_v19, 0.0  ;;  %vm679_vm15 = vcmp.ge.f32.partialorder %v675_v45, 0.0  ;;  %vm680_vm0 = vcmp.ge.f32.partialorder %v676_v22, 0.0 }
 0x13d   :  { %v693_v11 = vadd.f32 %v692_v53, %v691_v40  ;;  %v684_v8 = vmul.f32 %v681_v28, %v675_v45  ;;  %v685_v21 = vmul.f32 %v681_v28, %v676_v22  ;;  %v704_v7 = vmul.f32 %v2306_v12, %v2306_v12  ;;  %v1528_v40 = vld [vmem:[%s2578_s8 + $0x28] sm:$0xf]  ;;  %v1527_v53 = vld [vmem:[%s2578_s8 + $0x4] sm:$0xf] }
 0x13e   :  { %v705_v18 = vmul.f32 %v2308_v19, %v2308_v19 }
 0x13f   :  { %694 = vadd.xlane.f32.xlu1 %v693_v11  ;;  %v2318_v26 = vsel %vm679_vm15, %v675_v45, %v684_v8  ;;  %v2320_v16 = vsel %vm680_vm0, %v676_v22, %v685_v21  ;;  %v708_v4 = vsel %vm690_vm14, %v704_v7, 0.0  ;;  %v1526_v22 = vld [vmem:[%s2578_s8 + $0x24] sm:$0xf]  ;;  %v1530_v11 = vld [vmem:[%s2578_s8 + $0x2c] sm:$0xf] }
 0x140   :  { %v696_v24 = vsel %vm690_vm14, %v2318_v26, 0.0  ;;  %v697_v25 = vsel %vm690_vm14, %v2320_v16, 0.0  ;;  %v706_v28 = vmul.f32 %v2318_v26, %v2318_v26  ;;  %v707_v20 = vmul.f32 %v2320_v16, %v2320_v16  ;;  %v739_v45 = vld [vmem:[%s2575_s5] sm:$0xff]  ;;  %v1529_v8 = vld [vmem:[%s2578_s8 + $0x8] sm:$0xf] }
 0x141   :  { %v698_v61 = vadd.f32 %v697_v25, %v696_v24  ;;  %v709_v54 = vsel %vm690_vm14, %v705_v18, 0.0  ;;  %v1532_v21 = vld [vmem:[%s2578_s8 + $0x30] sm:$0xf]  ;;  %v1531_v7 = vld [vmem:[%s2578_s8 + $0xc] sm:$0xf] }
 0x142   :  { %v713_v6 = vsel %vm690_vm14, %v706_v28, 0.0  ;;  %v714_v15 = vsel %vm690_vm14, %v707_v20, 0.0  ;;  %v710_v35 = vadd.f32 %v709_v54, %v708_v4  ;;  %v1534_v18 = vld [vmem:[%s2578_s8 + $0x34] sm:$0xf]  ;;  %v1533_v24 = vld [vmem:[%s2578_s8 + $0x10] sm:$0xf] }
 0x143   :  { %699 = vadd.xlane.f32.xlu0 %v698_v61  ;;  %v715_v2 = vadd.f32 %v714_v15, %v713_v6  ;;  %v1536_v25 = vld [vmem:[%s2578_s8 + $0x38] sm:$0xf]  ;;  %v1535_v28 = vld [vmem:[%s2578_s8 + $0x14] sm:$0xf]  ;;  %v1627_v20 = vmov 0.0  }
 0x144   :  { %897 = vmatprep.mubr.f32.mxu1 %v1627_v20  ;;  %v1538_v61 = vld [vmem:[%s2578_s8 + $0x3c] sm:$0xf]  ;;  %820 = vmatprep.mubr.f32.mxu0 %v1627_v20  ;;  %v1537_v6 = vld [vmem:[%s2578_s8 + $0x18] sm:$0xf]  ;;  %v1540_v15 = vld [vmem:[%s2578_s8 + $0x40] sm:$0xf] }
 0x145   :  { %716 = vadd.xlane.f32.xlu1 %v715_v2  ;;  %v1539_v4 = vld [vmem:[%s2578_s8 + $0x1c] sm:$0xf]  ;;  %v1542_v54 = vld [vmem:[%s2578_s8 + $0x44] sm:$0xf]  ;;  %v1541_v2 = vld [vmem:[%s2578_s8 + $0x20] sm:$0xf] }
 0x147   :  { %711 = vadd.xlane.f32.xlu0 %v710_v35  ;;  %v1350_v35 = vld [vmem:[%s2579_s9] sm:$0xf] }
 0x156   :  { %1088 = vperm.xlu1 %1558, %v1085_v63  }
 0x15a   :  { %1099 = vperm.xlu1 %1558, %v1526_v22  }
 0x15d   :  { %743 = vperm.xlu0 %1557, %v739_v45  }
 0x15e   :  { %1129 = vperm.xlu1 %1558, %v1528_v40  }
 0x161   :  { %1114 = vperm.xlu0 %1557, %v1527_v53  }
 0x162   :  { %1159 = vperm.xlu1 %1558, %v1530_v11  }
 0x165   :  { %1144 = vperm.xlu0 %1557, %v1529_v8  }
 0x166   :  { %1189 = vperm.xlu1 %1558, %v1532_v21  }
 0x169   :  { %1174 = vperm.xlu0 %1557, %v1531_v7  }
 0x16a   :  { %1219 = vperm.xlu1 %1558, %v1534_v18  }
 0x16d   :  { %1204 = vperm.xlu0 %1557, %v1533_v24  }
 0x16e   :  { %1249 = vperm.xlu1 %1558, %v1536_v25  }
 0x171   :  { %1234 = vperm.xlu0 %1557, %v1535_v28  }
 0x172   :  { %1279 = vperm.xlu1 %1558, %v1538_v61  }
 0x175   :  { %1264 = vperm.xlu0 %1557, %v1537_v6  }
 0x176   :  { %1309 = vperm.xlu1 %1558, %v1540_v15  }
 0x179   :  { %1294 = vperm.xlu0 %1557, %v1539_v4  }
 0x17a   :  { %1339 = vperm.xlu1 %1558, %v1542_v54  }
 0x17d   :  { %1324 = vperm.xlu0 %1557, %v1541_v2  }
 0x181   :  { %1353 = vperm.xlu0 %1557, %v1350_v35  }
 0x1cc   :  { %v695_v63 = vpop.xlane.xlu1 %694 }
 0x1cd   :  { %v2396_v45 = vmul.f32 0.00390625, %v695_v63 }
 0x1cf   :  { %v720_v24 = vmul.f32 %v2396_v45, %v2396_v45 }
 0x1d0   :  { %v700_v22 = vpop.xlane.xlu0 %699 }
 0x1d1   :  { %v2398_v40 = vmul.f32 0.00390625, %v700_v22 }
 0x1d2   :  { %v717_v53 = vpop.xlane.xlu1 %716 }
 0x1d3   :  { %v721_v11 = vmul.f32 %v2398_v40, %v2398_v40  ;;  %v719_v8 = vmul.f32 0.00390625, %v717_v53 }
 0x1d4   :  { %v712_v21 = vpop.xlane.xlu0 %711 }
 0x1d5   :  { %v723_v7 = vsub.f32 %v719_v8, %v721_v11  ;;  %v718_v18 = vmul.f32 0.00390625, %v712_v21 }
 0x1d6   :  { %v1089_v25 = vpop.permute.xlu1 %1088 }
 0x1d7   :  { %v725_v28 = vmax.f32 %v723_v7, 0.0  ;;  %v722_v61 = vsub.f32 %v718_v18, %v720_v24  ;;  %v1091_v11 = vmul.f32 %v1089_v25, %v1967_v30  ;;  %v1092_v8 = vmul.f32 %v1089_v25, %v1980_v36 }
 0x1d8   :  { %v1093_v21 = vmul.f32 %v1089_v25, %v1982_v37  ;;  %v1094_v7 = vmul.f32 %v1089_v25, %v1986_v41 }
 0x1d9   :  { %v731_v6 = vadd.f32 1e-05, %v725_v28  ;;  %v724_v15 = vmax.f32 %v722_v61, 0.0 }
 0x1da   :  { %v1100_v4 = vpop.permute.xlu1 %1099 }
 0x1db   :  { %v730_v54 = vadd.f32 1e-05, %v724_v15  ;;  %v1102_v2 = vmul.f32 %v1100_v4, %v1972_v32  ;;  %v1103_v35 = vmul.f32 %v1100_v4, %v1974_v33  ;;  %v1104_v63 = vmul.f32 %v1100_v4, %v1976_v34 }
 0x1dc   :  { %v1105_v22 = vmul.f32 %v1100_v4, %v1984_v38  ;;  %v2408_v53 = vpop.permute.xlu0 %743  ;;  %1563 = vrsqrt.f32 %v731_v6  ;;  %v726_v32 = vsub.f32 %v2306_v12, %v2396_v45  ;;  %v727_v33 = vsub.f32 %v2308_v19, %v2396_v45  ;;  %v1577_v45 = vld [vmem:[%s2571_s1 + $0x10] sm:$0xff] }
 0x1dd   :  { %1565 = vrsqrt.f32 %v730_v54  ;;  %v1106_v34 = vadd.f32 %v1102_v2, %v1091_v11  ;;  %v1107_v38 = vadd.f32 %v1103_v35, %v1092_v8  ;;  %v1108_v24 = vadd.f32 %v1104_v63, %v1093_v21 }
 0x1de   :  { %v1130_v18 = vpop.permute.xlu1 %1129  ;;  %v1109_v28 = vadd.f32 %v1105_v22, %v1094_v7 }
 0x1df   :  { %v1132_v25 = vmul.f32 %v1130_v18, %v2020_v59  ;;  %v1133_v6 = vmul.f32 %v1130_v18, %v2023_v60  ;;  %v1134_v15 = vmul.f32 %v1130_v18, %v2032_v1  ;;  %v1135_v19 = vmul.f32 %v1130_v18, %v1955_v14 }
 0x1e0   :  { %v1115_v61 = vpop.permute.xlu0 %1114  ;;  %v729_v59 = vsub.f32 %v2320_v16, %v2398_v40 }
 0x1e1   :  { %v1117_v30 = vmul.f32 %v1115_v61, %v1989_v42  ;;  %v1118_v36 = vmul.f32 %v1115_v61, %v1992_v43  ;;  %v1119_v37 = vmul.f32 %v1115_v61, %v2004_v48  ;;  %v1120_v41 = vmul.f32 %v1115_v61, %v2013_v56  ;;  %v2647_v61 = vld [vmem:[#allocation13_spill] sm:$0xff] }
 0x1e2   :  { %v1160_v4 = vpop.permute.xlu1 %1159  ;;  %v728_v42 = vsub.f32 %v2318_v26, %v2398_v40 }
 0x1e3   :  { %v1121_v54 = vadd.f32 %v1117_v30, %v1106_v34  ;;  %v1122_v2 = vadd.f32 %v1118_v36, %v1107_v38  ;;  %v1123_v35 = vadd.f32 %v1119_v37, %v1108_v24  ;;  %v1124_v63 = vadd.f32 %v1120_v41, %v1109_v28  ;;  %v2648_v30 = vld [vmem:[#allocation12_spill] sm:$0xff]  ;;  %v2649_v36 = vld [vmem:[#allocation14_spill] sm:$0xff]  ;;  %v2650_v41 = vld [vmem:[#allocation15_spill] sm:$0xff] }
 0x1e4   :  { %v1162_v43 = vmul.f32 %v1160_v4, %v2051_v46  ;;  %v1163_v48 = vmul.f32 %v1160_v4, %v1970_v31  ;;  %v1145_v56 = vpop.permute.xlu0 %1144  ;;  %v1164_v31 = vmul.f32 %v1160_v4, %v2061_v50  ;;  %v1165_v18 = vmul.f32 %v1160_v4, %v1995_v44 }
 0x1e5   :  { %v1136_v60 = vadd.f32 %v1132_v25, %v1121_v54  ;;  %v1137_v1 = vadd.f32 %v1133_v6, %v1122_v2  ;;  %v1138_v14 = vadd.f32 %v1134_v15, %v1123_v35  ;;  %v1139_v22 = vadd.f32 %v1135_v19, %v1124_v63 }
 0x1e6   :  { %v1147_v11 = vmul.f32 %v1145_v56, %v2041_v13  ;;  %v1148_v8 = vmul.f32 %v1145_v56, %v1960_v23  ;;  %v1149_v21 = vmul.f32 %v1145_v56, %v2046_v29  ;;  %v1150_v26 = vmul.f32 %v1145_v56, %v1965_v27  ;;  %v1190_v46 = vpop.permute.xlu1 %1189  ;;  %v1564_v7 = vpop.eup %1563 }
 0x1e7   :  { %v1192_v16 = vmul.f32 %v1190_v46, %v2093_v55  ;;  %v1193_v40 = vmul.f32 %v1190_v46, %v2096_v57  ;;  %v1566_v34 = vpop.eup %1565  ;;  %v2651_v57 = vld [vmem:[#allocation16_spill] sm:$0xff]  ;;  %v737_v4 = vmul.f32 %v1564_v7, %v729_v59  ;;  %v736_v54 = vmul.f32 %v1564_v7, %v728_v42 }
 0x1e8   :  { %v1151_v38 = vadd.f32 %v1147_v11, %v1136_v60  ;;  %v1152_v24 = vadd.f32 %v1148_v8, %v1137_v1  ;;  %v1153_v13 = vadd.f32 %v1149_v21, %v1138_v14  ;;  %v1154_v28 = vadd.f32 %v1150_v26, %v1139_v22  ;;  %v1175_v23 = vpop.permute.xlu0 %1174  ;;  %v738_v1 = vld [vmem:[%s2574_s4] sm:$0xff]  ;;  %v2652_v22 = vld [vmem:[#allocation17_spill] sm:$0xff] }
 0x1e9   :  { %v1177_v29 = vmul.f32 %v1175_v23, %v2647_v61  ;;  %v1178_v27 = vmul.f32 %v1175_v23, %v2648_v30  ;;  %v1179_v37 = vmul.f32 %v1175_v23, %v2649_v36  ;;  %v1180_v50 = vmul.f32 %v1175_v23, %v2650_v41  ;;  %1519 = vmatprep.subr.msk.mxu1 %vm690_vm14, %v737_v4  ;;  %v1575_v21 = vld [vmem:[%s2571_s1] sm:$0xff]  ;;  %v2657_v36 = vld [vmem:[#allocation24_spill] sm:$0xff]  ;;  %v2658_v41 = vld [vmem:[#allocation25_spill] sm:$0xff] }
 0x1ea   :  { %v1166_v25 = vadd.f32 %v1162_v43, %v1151_v38  ;;  %v1167_v44 = vadd.f32 %v1163_v48, %v1152_v24  ;;  %v1168_v6 = vadd.f32 %v1164_v31, %v1153_v13  ;;  %v1169_v55 = vadd.f32 %v1165_v18, %v1154_v28  ;;  %v1220_v15 = vpop.permute.xlu1 %1219  ;;  %1520 = vmatpush1.msk.msra.mxu1 %vm690_vm14, %v736_v54  ;;  %v1576_v31 = vld [vmem:[%s2571_s1 + $0x8] sm:$0xff]  ;;  %v2654_v18 = vld [vmem:[#allocation10_spill] sm:$0xff]  ;;  %v2655_v38 = vld [vmem:[#allocation9_spill] sm:$0xff] }
 0x1eb   :  { %v1194_v19 = vmul.f32 %v1190_v46, %v2651_v57  ;;  %v735_v2 = vmul.f32 %v1566_v34, %v727_v33  ;;  %v1195_v43 = vmul.f32 %v1190_v46, %v2652_v22  ;;  %v734_v33 = vmul.f32 %v1566_v34, %v726_v32  ;;  %1521 = vmatmul.mubr.msk.f32.vlgmr.msra.gmra.mrb[0].mxu1 %vm746_vm1, %v738_v1  ;;  %v2653_v46 = vld [vmem:[#allocation8_spill] sm:$0xff]  ;;  %v2656_v28 = vld [vmem:[#allocation11_spill] sm:$0xff]  ;;  %v2661_v54 = vld [vmem:[#allocation26_spill] sm:$0xff] }
 0x1ec   :  { %v1181_v35 = vadd.f32 %v1177_v29, %v1166_v25  ;;  %v1182_v63 = vadd.f32 %v1178_v27, %v1167_v44  ;;  %v1183_v56 = vadd.f32 %v1179_v37, %v1168_v6  ;;  %v1184_v60 = vadd.f32 %v1180_v50, %v1169_v55  ;;  %v1205_v14 = vpop.permute.xlu0 %1204  ;;  %v2659_v25 = vld [vmem:[#allocation18_spill] sm:$0xff]  ;;  %1064 = vmatprep.mubr.f32.mxu1 %v1627_v20  ;;  %v2660_v4 = vld [vmem:[#allocation19_spill] sm:$0xff]  ;;  %v2664_v22 = vld [vmem:[#allocation21_spill] sm:$0xff] }
 0x1ed   :  { %1516 = vmatprep.subr.msk.mxu0 %vm690_vm14, %v735_v2  ;;  %v1207_v26 = vmul.f32 %v1575_v21, %v1205_v14  ;;  %v1208_v7 = vmul.f32 %v1205_v14, %v2653_v46  ;;  %v1209_v12 = vmul.f32 %v1576_v31, %v1205_v14  ;;  %v1222_v32 = vmul.f32 %v1577_v45, %v1220_v15 }
 0x1ee   :  { %v1196_v42 = vadd.f32 %v1192_v16, %v1181_v35  ;;  %v1197_v48 = vadd.f32 %v1193_v40, %v1182_v63  ;;  %v1198_v59 = vadd.f32 %v1194_v19, %v1183_v56  ;;  %v1250_v11 = vpop.permute.xlu1 %1249  ;;  %v1199_v8 = vadd.f32 %v1195_v43, %v1184_v60  ;;  %v1578_v40 = vld [vmem:[%s2571_s1 + $0x18] sm:$0xff]  ;;  %1517 = vmatpush1.msk.msra.mxu0 %vm690_vm14, %v734_v33  ;;  %v2662_v35 = vld [vmem:[#allocation27_spill] sm:$0xff]  ;;  %v2663_v56 = vld [vmem:[#allocation20_spill] sm:$0xff]  ;;  %s1525_s1 = sld [smem:[#allocation2 + $0x3]] }
 0x1ef   :  { %v1223_v16 = vmul.f32 %v1220_v15, %v2654_v18  ;;  %v1224_v34 = vmul.f32 %v1578_v40, %v1220_v15  ;;  %v1210_v24 = vmul.f32 %v1205_v14, %v2655_v38  ;;  %v1225_v23 = vmul.f32 %v1220_v15, %v2656_v28  ;;  %1518 = vmatmul.mubr.msk.f32.vlgmr.msra.gmra.mrb[0].mxu0 %vm746_vm1, %v738_v1  ;;  %v2667_v38 = vld [vmem:[#allocation28_spill] sm:$0xff] }
 0x1f0   :  { %v1235_v13 = vpop.permute.xlu0 %1234  ;;  %v1211_v61 = vadd.f32 %v1207_v26, %v1196_v42  ;;  %v1212_v29 = vadd.f32 %v1208_v7, %v1197_v48  ;;  %v1213_v30 = vadd.f32 %v1209_v12, %v1198_v59  ;;  %993 = vmatprep.mubr.f32.mxu0 %v1627_v20  ;;  %v1252_v2 = vmul.f32 %v1250_v11, %v2661_v54  ;;  %v2665_v26 = vld [vmem:[#allocation22_spill] sm:$0xff]  ;;  %v2666_v12 = vld [vmem:[#allocation23_spill] sm:$0xff] }
 0x1f1   :  { %v1214_v27 = vadd.f32 %v1210_v24, %v1199_v8  ;;  %v1237_v37 = vmul.f32 %v1235_v13, %v2657_v36  ;;  %v1238_v50 = vmul.f32 %v1235_v13, %v2658_v41  ;;  %v1239_v44 = vmul.f32 %v1235_v13, %v2659_v25  ;;  %v2672_v25 = vld [vmem:[#allocation33_spill] sm:$0xff] }
 0x1f2   :  { %v1280_v6 = vpop.permute.xlu1 %1279  ;;  %v1226_v55 = vadd.f32 %v1222_v32, %v1211_v61  ;;  %v1227_v57 = vadd.f32 %v1223_v16, %v1212_v29  ;;  %v1228_v19 = vadd.f32 %v1224_v34, %v1213_v30  ;;  %v1240_v15 = vmul.f32 %v1235_v13, %v2660_v4  ;;  %v2669_v30 = vld [vmem:[#allocation30_spill] sm:$0xff] }
 0x1f3   :  { %v1253_v63 = vmul.f32 %v1250_v11, %v2662_v35  ;;  %v1254_v60 = vmul.f32 %v1250_v11, %v2663_v56  ;;  %v1229_v1 = vadd.f32 %v1225_v23, %v1214_v27  ;;  %v1255_v43 = vmul.f32 %v1250_v11, %v2664_v22  ;;  %v2668_v23 = vld [vmem:[#allocation29_spill] sm:$0xff]  ;;  %v2673_v35 = vld [vmem:[#allocation34_spill] sm:$0xff]  ;;  %v2674_v56 = vld [vmem:[#allocation35_spill] sm:$0xff] }
 0x1f4   :  { %v1265_v14 = vpop.permute.xlu0 %1264  ;;  %v1241_v33 = vadd.f32 %v1237_v37, %v1226_v55  ;;  %v1242_v42 = vadd.f32 %v1238_v50, %v1227_v57  ;;  %v1243_v48 = vadd.f32 %v1239_v44, %v1228_v19  ;;  %v1282_v18 = vmul.f32 %v1280_v6, %v2205_v52 }
 0x1f5   :  { %v1244_v59 = vadd.f32 %v1240_v15, %v1229_v1  ;;  %v1267_v8 = vmul.f32 %v1265_v14, %v2189_v62  ;;  %v1268_v21 = vmul.f32 %v1265_v14, %v2192_v10  ;;  %v1269_v20 = vmul.f32 %v1265_v14, %v2665_v26 }
 0x1f6   :  { %v1256_v46 = vadd.f32 %v1252_v2, %v1241_v33  ;;  %v1257_v7 = vadd.f32 %v1253_v63, %v1242_v42  ;;  %v1258_v31 = vadd.f32 %v1254_v60, %v1243_v48  ;;  %v1270_v45 = vmul.f32 %v1265_v14, %v2666_v12  ;;  %v1310_v32 = vpop.permute.xlu1 %1309 }
 0x1f7   :  { %v1283_v11 = vmul.f32 %v1280_v6, %v2208_v51  ;;  %v1284_v16 = vmul.f32 %v1280_v6, %v2211_v58  ;;  %v1259_v40 = vadd.f32 %v1255_v43, %v1244_v59  ;;  %v1285_v62 = vmul.f32 %v1280_v6, %v2667_v38  ;;  %v2670_v51 = vld [vmem:[#allocation31_spill] sm:$0xff]  ;;  %v2671_v58 = vld [vmem:[#allocation32_spill] sm:$0xff] }
 0x1f8   :  { %v1295_v34 = vpop.permute.xlu0 %1294  ;;  %v1271_v24 = vadd.f32 %v1267_v8, %v1256_v46  ;;  %v1272_v10 = vadd.f32 %v1268_v21, %v1257_v7  ;;  %v1273_v13 = vadd.f32 %v1269_v20, %v1258_v31  ;;  %v1312_v50 = vmul.f32 %v1310_v32, %v2671_v58 }
 0x1f9   :  { %v1274_v28 = vadd.f32 %v1270_v45, %v1259_v40  ;;  %v1297_v61 = vmul.f32 %v1295_v34, %v2668_v23  ;;  %v1298_v29 = vmul.f32 %v1295_v34, %v2224_v49  ;;  %v1299_v27 = vmul.f32 %v1295_v34, %v2669_v30 }
 0x1fa   :  { %v1286_v36 = vadd.f32 %v1282_v18, %v1271_v24  ;;  %v1287_v52 = vadd.f32 %v1283_v11, %v1272_v10  ;;  %v1288_v37 = vadd.f32 %v1284_v16, %v1273_v13  ;;  %v1300_v41 = vmul.f32 %v1295_v34, %v2670_v51  ;;  %v1340_v54 = vpop.permute.xlu1 %1339 }
 0x1fb   :  { %v1313_v44 = vmul.f32 %v1310_v32, %v2672_v25  ;;  %v1314_v6 = vmul.f32 %v1310_v32, %v2261_v39  ;;  %v1289_v55 = vadd.f32 %v1285_v62, %v1274_v28  ;;  %v1315_v19 = vmul.f32 %v1310_v32, %v2264_v9  ;;  %v2675_v39 = vld [vmem:[#allocation36_spill] sm:$0xff] }
 0x1fc   :  { %v1325_v57 = vpop.permute.xlu0 %1324  ;;  %v1301_v4 = vadd.f32 %v1297_v61, %v1286_v36  ;;  %v1302_v49 = vadd.f32 %v1298_v29, %v1287_v52  ;;  %v1303_v15 = vadd.f32 %v1299_v27, %v1288_v37  ;;  %v1342_v42 = vmul.f32 %v1340_v54, %v2290_v3 }
 0x1fd   :  { %v1304_v2 = vadd.f32 %v1300_v41, %v1289_v55  ;;  %v1327_v63 = vmul.f32 %v1325_v57, %v2673_v35  ;;  %v1328_v60 = vmul.f32 %v1325_v57, %v2674_v56  ;;  %v1329_v1 = vmul.f32 %v1325_v57, %v2273_v5 }
 0x1fe   :  { %v1316_v14 = vadd.f32 %v1312_v50, %v1301_v4  ;;  %v1317_v22 = vadd.f32 %v1313_v44, %v1302_v49  ;;  %v1318_v43 = vadd.f32 %v1314_v6, %v1303_v15  ;;  %v1330_v33 = vmul.f32 %v1325_v57, %v2675_v39  ;;  %v918_v44 = vld [vmem:[%s2577_s7] sm:$0xf] }
 0x1ff   :  { %v1343_v9 = vmul.f32 %v1340_v54, %v2287_v47  ;;  %v1319_v48 = vadd.f32 %v1315_v19, %v1304_v2  ;;  %v1344_v59 = vmul.f32 %v1340_v54, %v2300_v17  ;;  %v1345_v20 = vmul.f32 %v1340_v54, %v2297_v0 }
 0x200   :  { %v1331_v8 = vadd.f32 %v1327_v63, %v1316_v14  ;;  %v1332_v21 = vadd.f32 %v1328_v60, %v1317_v22  ;;  %v1333_v26 = vadd.f32 %v1329_v1, %v1318_v43  ;;  %v1364_v12 = vstv %s1525_s1  ;;  %v1354_v45 = vpop.permute.xlu0 %1353  ;;  %v917_v14 = vld [vmem:[%s2576_s6] sm:$0xf]  ;;  %s1522_s6 = sld [smem:[#allocation2 + $0x2]] }
 0x201   :  { %v1334_v46 = vadd.f32 %v1330_v33, %v1319_v48  ;;  %v908_v55 = vstv %s1515_s29 }
 0x202   :  { %v1346_v7 = vadd.f32 %v1342_v42, %v1331_v8  ;;  %v1347_v5 = vadd.f32 %v1343_v9, %v1332_v21  ;;  %v1348_v31 = vadd.f32 %v1344_v59, %v1333_v26 }
 0x203   :  { %v1349_v32 = vadd.f32 %v1345_v20, %v1334_v46 }
 0x204   :  { %v1356_v18 = vadd.f32 %v1354_v45, %v1346_v7  ;;  %v1357_v11 = vadd.f32 %v1354_v45, %v1347_v5  ;;  %v1358_v3 = vadd.f32 %v1354_v45, %v1348_v31 }
 0x205   :  { %v1359_v16 = vadd.f32 %v1354_v45, %v1349_v32 }
 0x206   :  { %v1365_v47 = vmul.f32 %v1364_v12, %v1356_v18  ;;  %v1366_v40 = vmul.f32 %v1364_v12, %v1357_v11  ;;  %v1367_v34 = vmul.f32 %v1364_v12, %v1358_v3  ;;  %vm1362_vm2 = vcmp.ge.f32.partialorder %v1358_v3, 0.0 }
 0x207   :  { %v1368_v17 = vmul.f32 %v1364_v12, %v1359_v16  ;;  %vm1363_vm3 = vcmp.ge.f32.partialorder %v1359_v16, 0.0  ;;  %vm1360_vm4 = vcmp.ge.f32.partialorder %v1356_v18, 0.0  ;;  %vm1361_vm5 = vcmp.ge.f32.partialorder %v1357_v11, 0.0 }
 0x208   :  { %v2508_v0 = vsel %vm1362_vm2, %v1358_v3, %v1367_v34  ;;  %v2510_v38 = vsel %vm1360_vm4, %v1356_v18, %v1365_v47  ;;  %v2512_v62 = vsel %vm1361_vm5, %v1357_v11, %v1366_v40  ;;  %v1075_v11 = vstv %s1522_s6 }
 0x209   :  { %v2514_v24 = vsel %vm1363_vm3, %v1359_v16, %v1368_v17  ;;  %v1378_v10 = vsel %vm690_vm14, %v2508_v0, 0.0  ;;  %v1373_v13 = vsel %vm690_vm14, %v2510_v38, 0.0  ;;  %v1374_v28 = vsel %vm690_vm14, %v2512_v62, 0.0 }
 0x20a   :  { %v1379_v23 = vsel %vm690_vm14, %v2514_v24, 0.0  ;;  %v1375_v61 = vadd.f32 %v1374_v28, %v1373_v13  ;;  %v1385_v29 = vmul.f32 %v2510_v38, %v2510_v38  ;;  %v1386_v30 = vmul.f32 %v2512_v62, %v2512_v62 }
 0x20b   :  { %v1380_v27 = vadd.f32 %v1379_v23, %v1378_v10  ;;  %v1387_v36 = vmul.f32 %v2508_v0, %v2508_v0  ;;  %v1388_v52 = vmul.f32 %v2514_v24, %v2514_v24 }
 0x20c   :  { %1376 = vadd.xlane.f32.xlu1 %v1375_v61  ;;  %v1389_v37 = vsel %vm690_vm14, %v1385_v29, 0.0  ;;  %v1390_v51 = vsel %vm690_vm14, %v1386_v30, 0.0 }
 0x20d   :  { %1381 = vadd.xlane.f32.xlu0 %v1380_v27  ;;  %v1394_v41 = vsel %vm690_vm14, %v1387_v36, 0.0  ;;  %v1395_v58 = vsel %vm690_vm14, %v1388_v52, 0.0  ;;  %v1391_v25 = vadd.f32 %v1390_v51, %v1389_v37 }
 0x20e   :  { %v1396_v50 = vadd.f32 %v1395_v58, %v1394_v41 }
 0x210   :  { %1397 = vadd.xlane.f32.xlu1 %v1396_v50 }
 0x211   :  { %1392 = vadd.xlane.f32.xlu0 %v1391_v25 }
 0x227   :  { %922 = vperm.xlu0 %1557, %v918_v44  }
 0x299   :  { %v1377_v33 = vpop.xlane.xlu1 %1376 }
 0x29a   :  { %v1383_v9 = vmul.f32 0.00390625, %v1377_v33 }
 0x29c   :  { %v1401_v21 = vmul.f32 %v1383_v9, %v1383_v9  ;;  %v1407_v40 = vsub.f32 %v2510_v38, %v1383_v9  ;;  %v1408_v10 = vsub.f32 %v2512_v62, %v1383_v9 }
 0x29d   :  { %v1398_v48 = vpop.xlane.xlu1 %1397 }
 0x29e   :  { %v1400_v26 = vmul.f32 0.00390625, %v1398_v48 }
 0x2be   :  { %v899_v6 = vpop.f32.mrb[0].mxu1 }
 0x2bf   :  { %v900_v57 = vadd.f32 %v899_v6, %v2408_v53  ;;  %v901_v19 = vpop.f32.mrb[1].mxu1 }
 0x2c0   :  { %v902_v4 = vadd.f32 %v901_v19, %v2408_v53 }
 0x2c1   :  { %v911_v15 = vmul.f32 %v908_v55, %v900_v57  ;;  %vm906_vm6 = vcmp.ge.f32.partialorder %v900_v57, 0.0 }
 0x2c2   :  { %v822_v49 = vpop.f32.mrb[0].mxu0  ;;  %v912_v35 = vmul.f32 %v908_v55, %v902_v4  ;;  %vm907_vm7 = vcmp.ge.f32.partialorder %v902_v4, 0.0 }
 0x2c3   :  { %v823_v54 = vadd.f32 %v822_v49, %v2408_v53  ;;  %v824_v2 = vpop.f32.mrb[1].mxu0  ;;  %v915_v22 = vsel %vm906_vm6, %v900_v57, %v911_v15 }
 0x2c4   :  { %v825_v63 = vadd.f32 %v824_v2, %v2408_v53  ;;  %v916_v1 = vsel %vm907_vm7, %v902_v4, %v912_v35  ;;  %v1382_v53 = vpop.xlane.xlu0 %1381 }
 0x2c5   :  { %v909_v56 = vmul.f32 %v908_v55, %v823_v54  ;;  %vm904_vm9 = vcmp.ge.f32.partialorder %v823_v54, 0.0  ;;  %1000 = vmatprep.subr.mxu1 %v916_v1  ;;  %v1384_v59 = vmul.f32 0.00390625, %v1382_v53 }
 0x2c6   :  { %v910_v60 = vmul.f32 %v908_v55, %v825_v63  ;;  %vm905_vm10 = vcmp.ge.f32.partialorder %v825_v63, 0.0  ;;  %1001 = vmatpush1.msra.mxu1 %v915_v22 }
 0x2c7   :  { %1524 = vmatmul.mubr.msk.f32.vlgmr.msra.gmra.mrb[2].mxu1 %vm925_vm8, %v917_v14  ;;  %v913_v39 = vsel %vm904_vm9, %v823_v54, %v909_v56  ;;  %v1402_v46 = vmul.f32 %v1384_v59, %v1384_v59  ;;  %v1409_v29 = vsub.f32 %v2508_v0, %v1384_v59  ;;  %v1410_v36 = vsub.f32 %v2514_v24, %v1384_v59 }
 0x2c8   :  { %v914_v43 = vsel %vm905_vm10, %v825_v63, %v910_v60  ;;  %v1393_v42 = vpop.xlane.xlu0 %1392 }
 0x2c9   :  { %929 = vmatprep.subr.mxu0 %v914_v43  ;;  %v1399_v8 = vmul.f32 0.00390625, %v1393_v42  ;;  %v1404_v7 = vsub.f32 %v1400_v26, %v1402_v46 }
 0x2ca   :  { %930 = vmatpush1.msra.mxu0 %v913_v39 }
 0x2cb   :  { %1523 = vmatmul.mubr.msk.f32.vlgmr.msra.gmra.mrb[2].mxu0 %vm925_vm8, %v917_v14  ;;  %v1403_v20 = vsub.f32 %v1399_v8, %v1401_v21  ;;  %v1406_v31 = vmax.f32 %v1404_v7, 0.0 }
 0x2cc   :  { %v923_v32 = vpop.permute.xlu0 %922 }
 0x2cd   :  { %v1405_v5 = vmax.f32 %v1403_v20, 0.0  ;;  %v1412_v45 = vadd.f32 1e-05, %v1406_v31 }
 0x2cf   :  { %v1411_v12 = vadd.f32 1e-05, %v1405_v5 }
 0x2d1   :  { %1567 = vrsqrt.f32 %v1411_v12 }
 0x2d2   :  { %1569 = vrsqrt.f32 %v1412_v45 }
 0x2db   :  { %v1568_v47 = vpop.eup %1567 }
 0x2dc   :  { %v1570_v61 = vpop.eup %1569  ;;  %v1415_v37 = vmul.f32 %v1568_v47, %v1407_v40  ;;  %v1416_v25 = vmul.f32 %v1568_v47, %v1408_v10 }
 0x2dd   :  { %v1417_v62 = vmul.f32 %v1570_v61, %v1409_v29  ;;  %v1418_v58 = vmul.f32 %v1570_v61, %v1410_v36 }
 0x39a   :  { %v1066_v18 = vpop.f32.mrb[2].mxu1 }
 0x39b   :  { %v1067_v3 = vadd.f32 %v1066_v18, %v923_v32  ;;  %v1068_v16 = vpop.f32.mrb[3].mxu1 }
 0x39c   :  { %v1069_v34 = vadd.f32 %v1068_v16, %v923_v32 }
 0x39d   :  { %vm1073_vm11 = vcmp.ge.f32.partialorder %v1067_v3, 0.0  ;;  %v1078_v13 = vmul.f32 %v1075_v11, %v1067_v3 }
 0x39e   :  { %v995_v17 = vpop.f32.mrb[2].mxu0  ;;  %vm1074_vm12 = vcmp.ge.f32.partialorder %v1069_v34, 0.0  ;;  %v1079_v30 = vmul.f32 %v1075_v11, %v1069_v34 }
 0x39f   :  { %v996_v28 = vadd.f32 %v995_v17, %v923_v32  ;;  %v997_v23 = vpop.f32.mrb[3].mxu0  ;;  %v1082_v38 = vsel %vm1073_vm11, %v1067_v3, %v1078_v13 }
 0x3a0   :  { %v998_v27 = vadd.f32 %v997_v23, %v923_v32  ;;  %v1083_v51 = vsel %vm1074_vm12, %v1069_v34, %v1079_v30  ;;  %v1421_v55 = vmul.f32 %v1417_v62, %v1082_v38 }
 0x3a1   :  { %vm1071_vm13 = vcmp.ge.f32.partialorder %v996_v28, 0.0  ;;  %v1076_v52 = vmul.f32 %v1075_v11, %v996_v28  ;;  %v1422_v0 = vmul.f32 %v1418_v58, %v1083_v51 }
 0x3a2   :  { %vm1072_vm15 = vcmp.ge.f32.partialorder %v998_v27, 0.0  ;;  %v1077_v41 = vmul.f32 %v1075_v11, %v998_v27  ;;  %v1428_v49 = vsel %vm690_vm14, %v1421_v55, 0.0  ;;  %v1437_v60 = vmul.f32 %v1421_v55, %v1421_v55 }
 0x3a3   :  { %v1080_v50 = vsel %vm1071_vm13, %v996_v28, %v1076_v52  ;;  %v1429_v15 = vsel %vm690_vm14, %v1422_v0, 0.0  ;;  %v1438_v1 = vmul.f32 %v1422_v0, %v1422_v0 }
 0x3a4   :  { %v1419_v44 = vmul.f32 %v1415_v37, %v1080_v50  ;;  %v1081_v6 = vsel %vm1072_vm15, %v998_v27, %v1077_v41  ;;  %v1430_v35 = vadd.f32 %v1429_v15, %v1428_v49  ;;  %v1444_v22 = vsel %vm690_vm14, %v1437_v60, 0.0 }
 0x3a5   :  { %v1420_v57 = vmul.f32 %v1416_v25, %v1081_v6  ;;  %v1445_v43 = vsel %vm690_vm14, %v1438_v1, 0.0 }
 0x3a6   :  { %v1423_v19 = vsel %vm690_vm14, %v1419_v44, 0.0  ;;  %v1435_v54 = vmul.f32 %v1419_v44, %v1419_v44  ;;  %v1446_v39 = vadd.f32 %v1445_v43, %v1444_v22 }
 0x3a7   :  { %v1424_v24 = vsel %vm690_vm14, %v1420_v57, 0.0  ;;  %v1436_v2 = vmul.f32 %v1420_v57, %v1420_v57 }
 0x3a8   :  { %v1425_v4 = vadd.f32 %v1424_v24, %v1423_v19  ;;  %v1439_v63 = vsel %vm690_vm14, %v1435_v54, 0.0 }
 0x3a9   :  { %v1440_v56 = vsel %vm690_vm14, %v1436_v2, 0.0 }
 0x3aa   :  { %1426 = vadd.xlane.f32.xlu1 %v1425_v4  ;;  %v1441_v14 = vadd.f32 %v1440_v56, %v1439_v63 }
 0x3ae   :  { %1431 = vadd.xlane.f32.xlu1 %v1430_v35 }
 0x3b2   :  { %1442 = vadd.xlane.f32.xlu1 %v1441_v14 }
 0x3b6   :  { %1447 = vadd.xlane.f32.xlu1 %v1446_v39 }
 0x437   :  { %v1427_v53 = vpop.xlane.xlu1 %1426 }
 0x438   :  { %v1433_v42 = vmul.f32 0.00390625, %v1427_v53 }
 0x43a   :  { %v1451_v59 = vmul.f32 %v1433_v42, %v1433_v42  ;;  %v1457_v32 = vsub.f32 %v1419_v44, %v1433_v42  ;;  %v1458_v18 = vsub.f32 %v1420_v57, %v1433_v42 }
 0x43b   :  { %v1432_v33 = vpop.xlane.xlu1 %1431 }
 0x43c   :  { %v1434_v48 = vmul.f32 0.00390625, %v1432_v33 }
 0x43e   :  { %v1452_v46 = vmul.f32 %v1434_v48, %v1434_v48  ;;  %v1459_v47 = vsub.f32 %v1421_v55, %v1434_v48  ;;  %v1460_v40 = vsub.f32 %v1422_v0, %v1434_v48 }
 0x43f   :  { %v1443_v9 = vpop.xlane.xlu1 %1442 }
 0x440   :  { %v1449_v8 = vmul.f32 0.00390625, %v1443_v9 }
 0x442   :  { %v1453_v21 = vsub.f32 %v1449_v8, %v1451_v59 }
 0x443   :  { %v1448_v26 = vpop.xlane.xlu1 %1447 }
 0x444   :  { %v1455_v20 = vmax.f32 %v1453_v21, 0.0  ;;  %v1450_v7 = vmul.f32 0.00390625, %v1448_v26 }
 0x446   :  { %v1461_v5 = vadd.f32 1e-05, %v1455_v20  ;;  %v1454_v31 = vsub.f32 %v1450_v7, %v1452_v46 }
 0x448   :  { %1571 = vrsqrt.f32 %v1461_v5  ;;  %v1456_v12 = vmax.f32 %v1454_v31, 0.0 }
 0x44a   :  { %v1462_v45 = vadd.f32 1e-05, %v1456_v12 }
 0x44c   :  { %1573 = vrsqrt.f32 %v1462_v45 }
 0x452   :  { %v1572_v11 = vpop.eup %1571 }
 0x453   :  { %v1465_v3 = vmul.f32 %v1572_v11, %v1457_v32  ;;  %v1466_v16 = vmul.f32 %v1572_v11, %v1458_v18 }
 0x455   :  { %v1473_v34 = vcombine.low %v1465_v3, %v1466_v16 }
 0x456   :  { %v1574_v17 = vpop.eup %1573 }
 0x457   :  { %v1467_v10 = vmul.f32 %v1574_v17, %v1459_v47  ;;  %v1468_v13 = vmul.f32 %v1574_v17, %v1460_v40  ;;  %1477 = vst [vmem:[#allocation5] sm:$0xff] %v1473_v34 }
 0x459   :  { %v1474_v28 = vcombine.low %v1467_v10, %v1468_v13 }
 0x45b   :  { %1478 = vst [vmem:[#allocation5 + $0x8] sm:$0xff] %v1474_v28 }
 0x45c   :  { %1602 = shalt.err (!%p1599_p9)
}
 0x45d   :  { %s1603_s16 = scalar_lea.hbm %s2580_s10, 256 }
 0x45e   :  { %p1604_p10 = scmp.ne.s32.totalorder %s2580_s10, %s1603_s16  ;;  %p1607_p11 = scmp.lt.u32.totalorder %s1603_s16, %s2580_s10 }
 0x460   :  { %p1609_p12 = pnand %p1607_p11, %p1604_p10 }
 0x462   :  { %1612 = shalt.err (!%p1609_p12)
}
 0x463   :  { %s1629_s21 = smov 128   ;;  %s1630_s5 = smov 8  }
 0x464   :  { %1490 = dma.vmem_to_hbm [thread:$0]  %s1485_s12, 256, %s2580_s10, [#allocation3], %s1629_s21, %s1629_s21, %s1630_s5  }
 0x465   :  { %1615 = dma.done.wait [#allocation3], 256  }
 0x466   :  { %1616 = vsyncadd [#allocation3], 4294967040 }
 0x467   :  { %1494 = vsyncpa [#allocation3], 1 }
 0x468   :  { %1495 = vsyncpa [#allocation4], 1 }

</bundles_post_ra>
